<compile_context>
chip_gen: v7x
topology: tpu7x:2x2x1
jax: 0.10.0
libtpu: 0.0.40
codegen_flags: <defaults>
</compile_context>

<pallas_src>
import functools

import jax
import jax.numpy as jnp
from jax import lax
from jax.experimental import pallas as pl
from jax.experimental.pallas import tpu as pltpu


def _vmem_limit_bytes():
    """Scoped-VMEM request with headroom: 3/4 of physical, capped at 100 MiB.

    v5e/v6e have 128 MiB physical VMEM per core, v7x only 64 MiB, so never
    hard-code 64 MiB.  Falls back to a safe 48 MiB if the query is unavailable.
    """
    try:
        cap = pltpu.get_tpu_info().vmem_capacity_bytes
        return int(min((cap * 3) // 4, 100 * 1024 * 1024))
    except Exception:
        return 48 * 1024 * 1024


def _bn_fold(gamma, beta, mean, var, eps):
    """Eval-mode BatchNorm -> (scale, bias):  y = conv * scale + bias."""
    scale = gamma / jnp.sqrt(var + eps)
    bias = beta - mean * scale
    return scale.astype(jnp.float32), bias.astype(jnp.float32)


# ---------------------------------------------------------------------------
# Fused GhostConv kernel:
#   primary half :  y1 = act(W1 @ x + b1)              (1x1 conv, MXU)
#   ghost   half :  y2 = act(DW5x5(y1) + b2)           (per-channel, VPU)
#   output       :  o[:, 0] = y1 (+res0) ; o[:, 1] = y2 (+res1)
#
# Block shapes (per grid step (b, j)):
#   x_ref  : (1, Cin, P)    pixels lane-dense
#   w1_ref : (tch, Cin)     BN scale folded in
#   b1_ref : (tch, 1)
#   wd_ref : (25, tch)      25 taps, channels-on-lanes, BN scale folded in
#   b2_ref : (1, tch)
#   res_ref: (1, 2, tch, P) optional residual (identity shortcut)
#   o_ref  : (1, 2, tch, P)
#   pad_ref: (H+4, W+4, tch) f32 scratch  (zero halo for the 5x5 DW conv)
#   y2_ref : (H, W, tch)     f32 scratch  (DW result before the store relayout)
# ---------------------------------------------------------------------------
def _ghost_conv_kernel(x_ref, w1_ref, b1_ref, wd_ref, b2_ref, *rest,
                       H, W, act, residual):
    if residual:
        res_ref, o_ref, pad_ref, y2_ref = rest
    else:
        o_ref, pad_ref, y2_ref = rest

    tch = o_ref.shape[2]

    # ---- primary branch: 1x1 conv (+ folded BN bias) (+ SiLU) on the MXU.
    x2 = x_ref[0]                                            # (Cin, P)
    y1 = jnp.dot(w1_ref[...], x2, preferred_element_type=jnp.float32)
    y1 = y1 + b1_ref[...]                                    # (tch, P)
    if act:
        y1 = y1 * jax.nn.sigmoid(y1)                         # SiLU

    out1 = y1
    if residual:
        out1 = out1 + res_ref[0, 0].astype(jnp.float32)
    o_ref[0, 0] = out1.astype(o_ref.dtype)                   # lane-dense store

    # ---- relayout to channels-on-lanes and write into the zero-halo scratch.
    pad_ref[...] = jnp.zeros(pad_ref.shape, pad_ref.dtype)
    y1_cl = jnp.transpose(y1, (1, 0)).reshape(H, W, tch)     # (H, W, tch)
    pad_ref[2:2 + H, 2:2 + W, :] = y1_cl

    # ---- ghost branch: 5x5 depthwise conv, one output-row strip at a time.
    # All 25 tap offsets are sublane / leading-dim address offsets (channels
    # on lanes -> no cross-lane shifts); the strip accumulator stays small.
    def row_body(h, carry):
        acc = jnp.zeros((1, W, tch), jnp.float32)
        for kh in range(5):
            for kw in range(5):
                tap = wd_ref[kh * 5 + kw:kh * 5 + kw + 1, :]           # (1, tch)
                acc = acc + pad_ref[pl.ds(h + kh, 1), kw:kw + W, :] * tap
        acc = acc + b2_ref[...]
        if act:
            acc = acc * jax.nn.sigmoid(acc)                  # SiLU
        y2_ref[pl.ds(h, 1)] = acc
        return carry

    lax.fori_loop(0, H, row_body, 0)

    # ---- ghost half store: back to (tch, P) so the HBM store is lane-dense.
    y2 = jnp.transpose(y2_ref[...].reshape(H * W, tch), (1, 0))
    out2 = y2
    if residual:
        out2 = out2 + res_ref[0, 1].astype(jnp.float32)
    o_ref[0, 1] = out2.astype(o_ref.dtype)


def _ghost_conv(x_img, w1, bn1, wd, bn2, *, eps, act, residual_img=None):
    """Fused GhostConv (+ optional residual), NCHW in / NCHW out.

    x_img:        (B, Cin, H, W)
    w1:           (Cp, Cin, 1, 1)  with Cp = Cout // 2   (primary 1x1 conv)
    wd:           (Cp, 1, 5, 5)                          (depthwise 5x5 conv)
    bn1 / bn2:    (gamma, beta, mean, var) for the two BN layers
    residual_img: (B, 2*Cp, H, W) or None; added to the concatenated output.
    returns       (B, 2*Cp, H, W)
    """
    B, Cin, H, W = x_img.shape
    P = H * W
    Cp = w1.shape[0]

    g1, b1, m1, v1 = bn1
    g2, b2, m2, v2 = bn2
    s1, bias1 = _bn_fold(g1, b1, m1, v1, eps)
    w1f = (w1.reshape(Cp, Cin) * s1[:, None]).astype(x_img.dtype)
    bias1 = bias1.reshape(Cp, 1)
    s2, bias2 = _bn_fold(g2, b2, m2, v2, eps)
    wdf = (wd.reshape(Cp, 25) * s2[:, None]).astype(jnp.float32).T   # (25, Cp)
    bias2 = bias2.reshape(1, Cp)

    x_flat = x_img.reshape(B, Cin, P)            # free contiguous reshape

    # Channel-block size: the full primary width, or a multiple of 128 so
    # every BlockSpec trailing dim is 128-aligned or full.
    tch = Cp if Cp <= 256 else 128
    nblk = pl.cdiv(Cp, tch)

    kernel = functools.partial(_ghost_conv_kernel, H=H, W=W, act=act,
                               residual=residual_img is not None)

    in_specs = [
        pl.BlockSpec((1, Cin, P), lambda b, j: (b, 0, 0)),   # x (resident over j)
        pl.BlockSpec((tch, Cin), lambda b, j: (j, 0)),       # folded 1x1 weight
        pl.BlockSpec((tch, 1), lambda b, j: (j, 0)),         # 1x1 BN bias
        pl.BlockSpec((25, tch), lambda b, j: (0, j)),        # folded DW taps
        pl.BlockSpec((1, tch), lambda b, j: (0, j)),         # DW BN bias
    ]
    args = [x_flat, w1f, bias1, wdf, bias2]
    if residual_img is not None:
        in_specs.append(pl.BlockSpec((1, 2, tch, P), lambda b, j: (b, 0, j, 0)))
        args.append(residual_img.reshape(B, 2, Cp, P))

    out = pl.pallas_call(
        kernel,
        out_shape=jax.ShapeDtypeStruct((B, 2, Cp, P), x_img.dtype),
        grid_spec=pltpu.PrefetchScalarGridSpec(
            num_scalar_prefetch=0,
            grid=(B, nblk),
            in_specs=in_specs,
            out_specs=pl.BlockSpec((1, 2, tch, P), lambda b, j: (b, 0, j, 0)),
            scratch_shapes=[
                pltpu.VMEM((H + 4, W + 4, tch), jnp.float32),   # zero-halo y1
                pltpu.VMEM((H, W, tch), jnp.float32),           # DW result
            ],
        ),
        compiler_params=pltpu.CompilerParams(
            dimension_semantics=("parallel", "parallel"),
            vmem_limit_bytes=_vmem_limit_bytes(),
        ),
    )(*args)
    return out.reshape(B, 2 * Cp, H, W)


# ---------------------------------------------------------------------------
# GhostBottleneck forward (s = 1), NCHW in / NCHW out.
# ---------------------------------------------------------------------------
def ghost_bottleneck_forward(x, p, eps=1e-5):
    B, c1, H, W = x.shape
    ch = p["w1"].shape[0]        # primary channels of GhostConv #1 (= c2 // 4)
    c_ = p["w2"].shape[0]        # primary channels of GhostConv #2 (= c2 // 2)
    c2 = 2 * c_
    # s == 1 -> shortcut is nn.Identity: fail loudly on a mismatched config.
    assert c1 == c2, f"identity shortcut requires c1 == c2, got c1={c1}, c2={c2}"
    assert p["w2"].shape[1] == 2 * ch, "GhostConv#1 output / GhostConv#2 input mismatch"

    # GhostConv(c1, c_)  [act = SiLU]  — PW + DW + concat fused in one kernel.
    y = _ghost_conv(x, p["w1"], (p["g1"], p["b1"], p["m1"], p["v1"]),
                    p["wd1"], (p["g2"], p["b2"], p["m2"], p["v2"]),
                    eps=eps, act=True)
    # GhostConv(c_, c2)  [act = False] + identity residual, fused.
    out = _ghost_conv(y, p["w2"], (p["g3"], p["b3"], p["m3"], p["v3"]),
                      p["wd2"], (p["g4"], p["b4"], p["m4"], p["v4"]),
                      eps=eps, act=False, residual_img=x)
    return out


ghost_bottleneck_forward_jit = jax.jit(ghost_bottleneck_forward)


# ---------------------------------------------------------------------------
# Pure-JAX (non-Pallas) reference for self-checking.
# ---------------------------------------------------------------------------
def _reference(x, p, eps=1e-5):
    def pw(h, w, gamma, beta, mean, var, act):
        co, ci = w.shape[0], w.shape[1]
        scale, bias = _bn_fold(gamma, beta, mean, var, eps)
        wf = (w.reshape(co, ci) * scale[:, None]).astype(jnp.float32)
        y = jnp.einsum("oc,bchw->bohw", wf, h.astype(jnp.float32))
        y = y + bias[None, :, None, None]
        return y * jax.nn.sigmoid(y) if act else y

    def dw(h, w, gamma, beta, mean, var, act):
        y = jax.lax.conv_general_dilated(
            h.astype(jnp.float32), w.astype(jnp.float32),
            window_strides=(1, 1), padding=[(2, 2), (2, 2)],
            dimension_numbers=("NCHW", "OIHW", "NCHW"),
            feature_group_count=h.shape[1],
            precision=jax.lax.Precision.HIGHEST)
        scale, bias = _bn_fold(gamma, beta, mean, var, eps)
        y = y * scale[None, :, None, None] + bias[None, :, None, None]
        return y * jax.nn.sigmoid(y) if act else y

    y1 = pw(x, p["w1"], p["g1"], p["b1"], p["m1"], p["v1"], True)
    y2 = dw(y1, p["wd1"], p["g2"], p["b2"], p["m2"], p["v2"], True)
    y = jnp.concatenate([y1, y2], axis=1)
    z1 = pw(y, p["w2"], p["g3"], p["b3"], p["m3"], p["v3"], False)
    z2 = dw(z1, p["wd2"], p["g4"], p["b4"], p["m4"], p["v4"], False)
    z = jnp.concatenate([z1, z2], axis=1)
    return (z + x.astype(jnp.float32)).astype(x.dtype)


if __name__ == "__main__":
    root = jax.random.PRNGKey(0)
    keys = jax.random.split(root, 9)

    # GhostBottleneck(c1=16, c2=16), s=1, on a (2, 16, 16, 16) NCHW input.
    B, H, W = 2, 16, 16
    c1 = c2 = 16
    c_ = c2 // 2                 # hidden width of the bottleneck        -> 8
    ch = c_ // 2                 # primary channels inside GhostConv #1  -> 4

    def bn_params(key, n):
        k1, k2, k3, k4 = jax.random.split(key, 4)
        gamma = 1.0 + 0.1 * jax.random.normal(k1, (n,), jnp.float32)
        beta = 0.1 * jax.random.normal(k2, (n,), jnp.float32)
        mean = 0.1 * jax.random.normal(k3, (n,), jnp.float32)
        var = 1.0 + 0.1 * jax.random.uniform(k4, (n,), jnp.float32)
        return gamma, beta, mean, var

    x = jax.random.normal(keys[0], (B, c1, H, W), dtype=jnp.float32)

    p = {}
    # GhostConv(c1, c_).cv1 : Conv2d(c1, c_//2, k=1, bias=False) + BN + SiLU
    p["w1"] = 0.1 * jax.random.normal(keys[1], (ch, c1, 1, 1), jnp.float32)
    p["g1"], p["b1"], p["m1"], p["v1"] = bn_params(keys[2], ch)
    # GhostConv(c1, c_).cv2 : depthwise Conv2d(c_//2, c_//2, k=5, groups=c_//2)
    p["wd1"] = 0.1 * jax.random.normal(keys[3], (ch, 1, 5, 5), jnp.float32)
    p["g2"], p["b2"], p["m2"], p["v2"] = bn_params(keys[4], ch)
    # GhostConv(c_, c2).cv1 : Conv2d(c_, c_, k=1, bias=False) + BN (no act)
    p["w2"] = 0.1 * jax.random.normal(keys[5], (c_, c_, 1, 1), jnp.float32)
    p["g3"], p["b3"], p["m3"], p["v3"] = bn_params(keys[6], c_)
    # GhostConv(c_, c2).cv2 : depthwise Conv2d(c_, c_, k=5, groups=c_) + BN
    p["wd2"] = 0.1 * jax.random.normal(keys[7], (c_, 1, 5, 5), jnp.float32)
    p["g4"], p["b4"], p["m4"], p["v4"] = bn_params(keys[8], c_)

    out = jax.block_until_ready(ghost_bottleneck_forward_jit(x, p))
    ref = _reference(x, p)

    assert out.shape == (B, c2, H, W), out.shape
    max_err = float(jnp.max(jnp.abs(out - ref)))
    assert jnp.allclose(out, ref, atol=1e-3, rtol=1e-3), f"mismatch: {max_err}"

    print("KERNEL_OK")
</pallas_src>

<mosaic_0001>
module attributes {stable_mosaic.version = 11 : i64} {
  func.func @_ghost_conv_kernel(%arg0: i32, %arg1: i32, %arg2: memref<1x16x256xf32, #tpu.memory_space<vmem>>, %arg3: memref<4x16xf32, #tpu.memory_space<vmem>>, %arg4: memref<4x1xf32, #tpu.memory_space<vmem>>, %arg5: memref<25x4xf32, #tpu.memory_space<vmem>>, %arg6: memref<1x4xf32, #tpu.memory_space<vmem>>, %arg7: memref<1x2x4x256xf32, #tpu.memory_space<vmem>>, %arg8: memref<20x20x4xf32, #tpu.memory_space<vmem>>, %arg9: memref<16x16x4xf32, #tpu.memory_space<vmem>>) attributes {dimension_semantics = [#tpu.dimension_semantics<parallel>, #tpu.dimension_semantics<parallel>], iteration_bounds = array<i64: 2, 1>, scalar_prefetch = 0 : i64, scratch_operands = 2 : i64, tpu.core_type = #tpu.core_type<tc>, window_params = [{transform_indices = @transform_0, window_bounds = array<i64: 1, 16, 256>}, {transform_indices = @transform_1, window_bounds = array<i64: 4, 16>}, {transform_indices = @transform_2, window_bounds = array<i64: 4, 1>}, {transform_indices = @transform_3, window_bounds = array<i64: 25, 4>}, {transform_indices = @transform_4, window_bounds = array<i64: 1, 4>}, {transform_indices = @transform_5, window_bounds = array<i64: 1, 2, 4, 256>}]} {
    %c0 = arith.constant 0 : index
    %c0_0 = arith.constant 0 : index
    %c0_1 = arith.constant 0 : index
    %0 = vector.load %arg2[%c0, %c0_0, %c0_1] : memref<1x16x256xf32, #tpu.memory_space<vmem>>, vector<1x16x256xf32>
    %1 = vector.shape_cast %0 : vector<1x16x256xf32> to vector<16x256xf32>
    %c0_2 = arith.constant 0 : index
    %c0_3 = arith.constant 0 : index
    %2 = vector.load %arg3[%c0_2, %c0_3] : memref<4x16xf32, #tpu.memory_space<vmem>>, vector<4x16xf32>
    %cst = arith.constant dense<0.000000e+00> : vector<4x256xf32>
    %3 = tpu.matmul %2, %1, %cst {dimension_numbers = #tpu.dot_dimension_numbers<[1], [0], [0], [1], [0, 0, 1, 1], [], []>} : vector<4x16xf32>, vector<16x256xf32>, vector<4x256xf32> -> vector<4x256xf32>
    %c0_4 = arith.constant 0 : index
    %c0_5 = arith.constant 0 : index
    %4 = vector.load %arg4[%c0_4, %c0_5] : memref<4x1xf32, #tpu.memory_space<vmem>>, vector<4x1xf32>
    %5 = vector.broadcast %4 : vector<4x1xf32> to vector<4x256xf32>
    %6 = arith.addf %3, %5 : vector<4x256xf32>
    %7 = arith.negf %6 : vector<4x256xf32>
    %8 = math.exp %7 : vector<4x256xf32>
    %cst_6 = arith.constant 1.000000e+00 : f32
    %9 = vector.broadcast %cst_6 : f32 to vector<4x256xf32>
    %10 = arith.addf %9, %8 : vector<4x256xf32>
    %11 = arith.divf %9, %10 : vector<4x256xf32>
    %12 = arith.mulf %6, %11 : vector<4x256xf32>
    %c0_7 = arith.constant 0 : index
    %c0_8 = arith.constant 0 : index
    %c0_9 = arith.constant 0 : index
    %c0_10 = arith.constant 0 : index
    %13 = vector.load %arg7[%c0_7, %c0_8, %c0_9, %c0_10] : memref<1x2x4x256xf32, #tpu.memory_space<vmem>>, vector<1x1x4x256xf32>
    %14 = vector.shape_cast %13 : vector<1x1x4x256xf32> to vector<4x256xf32>
    %15 = vector.shape_cast %12 : vector<4x256xf32> to vector<1x1x4x256xf32>
    tpu.vector_store %arg7[%c0_7, %c0_8, %c0_9, %c0_10], %15 {strides = array<i32>} : memref<1x2x4x256xf32, #tpu.memory_space<vmem>>, vector<1x1x4x256xf32>,
    %cst_11 = arith.constant 0.000000e+00 : f32
    %16 = vector.broadcast %cst_11 : f32 to vector<20x20x4xf32>
    %c0_12 = arith.constant 0 : index
    %c0_13 = arith.constant 0 : index
    %c0_14 = arith.constant 0 : index
    %17 = vector.load %arg8[%c0_12, %c0_13, %c0_14] : memref<20x20x4xf32, #tpu.memory_space<vmem>>, vector<20x20x4xf32>
    tpu.vector_store %arg8[%c0_12, %c0_13, %c0_14], %16 {strides = array<i32>} : memref<20x20x4xf32, #tpu.memory_space<vmem>>, vector<20x20x4xf32>,
    %18 = tpu.transpose %12, [1, 0] : vector<4x256xf32> -> vector<256x4xf32>
    %19 = vector.shape_cast %18 : vector<256x4xf32> to vector<16x16x4xf32>
    %c2 = arith.constant 2 : index
    %c2_15 = arith.constant 2 : index
    %c0_16 = arith.constant 0 : index
    %20 = vector.load %arg8[%c2, %c2_15, %c0_16] : memref<20x20x4xf32, #tpu.memory_space<vmem>>, vector<16x16x4xf32>
    tpu.vector_store %arg8[%c2, %c2_15, %c0_16], %19 {strides = array<i32>} : memref<20x20x4xf32, #tpu.memory_space<vmem>>, vector<16x16x4xf32>,
    %c0_i32 = arith.constant 0 : i32
    %c16_i32 = arith.constant 16 : i32
    %21 = arith.addi %c0_i32, %c16_i32 : i32
    %c1_i32 = arith.constant 1 : i32
    scf.for %arg10 = %c0_i32 to %21 step %c1_i32  : i32 {
      %cst_24 = arith.constant 0.000000e+00 : f32
      %28 = vector.broadcast %cst_24 : f32 to vector<1x16x4xf32>
      %c0_25 = arith.constant 0 : index
      %c0_26 = arith.constant 0 : index
      %29 = vector.load %arg5[%c0_25, %c0_26] : memref<25x4xf32, #tpu.memory_space<vmem>>, vector<1x4xf32>
      %c0_i32_27 = arith.constant 0 : i32
      %30 = arith.addi %arg10, %c0_i32_27 : i32
      %31 = arith.index_cast %30 : i32 to index
      %c0_28 = arith.constant 0 : index
      %c0_29 = arith.constant 0 : index
      %32 = vector.load %arg8[%31, %c0_28, %c0_29] : memref<20x20x4xf32, #tpu.memory_space<vmem>>, vector<1x16x4xf32>
      %33 = vector.shape_cast %29 : vector<1x4xf32> to vector<1x1x4xf32>
      %34 = vector.broadcast %33 : vector<1x1x4xf32> to vector<1x16x4xf32>
      %35 = arith.mulf %32, %34 : vector<1x16x4xf32>
      %36 = arith.addf %28, %35 : vector<1x16x4xf32>
      %c1_30 = arith.constant 1 : index
      %c0_31 = arith.constant 0 : index
      %37 = vector.load %arg5[%c1_30, %c0_31] : memref<25x4xf32, #tpu.memory_space<vmem>>, vector<1x4xf32>
      %c0_i32_32 = arith.constant 0 : i32
      %38 = arith.addi %arg10, %c0_i32_32 : i32
      %39 = arith.index_cast %38 : i32 to index
      %c1_33 = arith.constant 1 : index
      %c0_34 = arith.constant 0 : index
      %40 = vector.load %arg8[%39, %c1_33, %c0_34] : memref<20x20x4xf32, #tpu.memory_space<vmem>>, vector<1x16x4xf32>
      %41 = vector.shape_cast %37 : vector<1x4xf32> to vector<1x1x4xf32>
      %42 = vector.broadcast %41 : vector<1x1x4xf32> to vector<1x16x4xf32>
      %43 = arith.mulf %40, %42 : vector<1x16x4xf32>
      %44 = arith.addf %36, %43 : vector<1x16x4xf32>
      %c2_35 = arith.constant 2 : index
      %c0_36 = arith.constant 0 : index
      %45 = vector.load %arg5[%c2_35, %c0_36] : memref<25x4xf32, #tpu.memory_space<vmem>>, vector<1x4xf32>
      %c0_i32_37 = arith.constant 0 : i32
      %46 = arith.addi %arg10, %c0_i32_37 : i32
      %47 = arith.index_cast %46 : i32 to index
      %c2_38 = arith.constant 2 : index
      %c0_39 = arith.constant 0 : index
      %48 = vector.load %arg8[%47, %c2_38, %c0_39] : memref<20x20x4xf32, #tpu.memory_space<vmem>>, vector<1x16x4xf32>
      %49 = vector.shape_cast %45 : vector<1x4xf32> to vector<1x1x4xf32>
      %50 = vector.broadcast %49 : vector<1x1x4xf32> to vector<1x16x4xf32>
      %51 = arith.mulf %48, %50 : vector<1x16x4xf32>
      %52 = arith.addf %44, %51 : vector<1x16x4xf32>
      %c3 = arith.constant 3 : index
      %c0_40 = arith.constant 0 : index
      %53 = vector.load %arg5[%c3, %c0_40] : memref<25x4xf32, #tpu.memory_space<vmem>>, vector<1x4xf32>
      %c0_i32_41 = arith.constant 0 : i32
      %54 = arith.addi %arg10, %c0_i32_41 : i32
      %55 = arith.index_cast %54 : i32 to index
      %c3_42 = arith.constant 3 : index
      %c0_43 = arith.constant 0 : index
      %56 = vector.load %arg8[%55, %c3_42, %c0_43] : memref<20x20x4xf32, #tpu.memory_space<vmem>>, vector<1x16x4xf32>
      %57 = vector.shape_cast %53 : vector<1x4xf32> to vector<1x1x4xf32>
      %58 = vector.broadcast %57 : vector<1x1x4xf32> to vector<1x16x4xf32>
      %59 = arith.mulf %56, %58 : vector<1x16x4xf32>
      %60 = arith.addf %52, %59 : vector<1x16x4xf32>
      %c4 = arith.constant 4 : index
      %c0_44 = arith.constant 0 : index
      %61 = vector.load %arg5[%c4, %c0_44] : memref<25x4xf32, #tpu.memory_space<vmem>>, vector<1x4xf32>
      %c0_i32_45 = arith.constant 0 : i32
      %62 = arith.addi %arg10, %c0_i32_45 : i32
      %63 = arith.index_cast %62 : i32 to index
      %c4_46 = arith.constant 4 : index
      %c0_47 = arith.constant 0 : index
      %64 = vector.load %arg8[%63, %c4_46, %c0_47] : memref<20x20x4xf32, #tpu.memory_space<vmem>>, vector<1x16x4xf32>
      %65 = vector.shape_cast %61 : vector<1x4xf32> to vector<1x1x4xf32>
      %66 = vector.broadcast %65 : vector<1x1x4xf32> to vector<1x16x4xf32>
      %67 = arith.mulf %64, %66 : vector<1x16x4xf32>
      %68 = arith.addf %60, %67 : vector<1x16x4xf32>
      %c5 = arith.constant 5 : index
      %c0_48 = arith.constant 0 : index
      %69 = vector.load %arg5[%c5, %c0_48] : memref<25x4xf32, #tpu.memory_space<vmem>>, vector<1x4xf32>
      %c1_i32_49 = arith.constant 1 : i32
      %70 = arith.addi %arg10, %c1_i32_49 : i32
      %71 = arith.index_cast %70 : i32 to index
      %c0_50 = arith.constant 0 : index
      %c0_51 = arith.constant 0 : index
      %72 = vector.load %arg8[%71, %c0_50, %c0_51] : memref<20x20x4xf32, #tpu.memory_space<vmem>>, vector<1x16x4xf32>
      %73 = vector.shape_cast %69 : vector<1x4xf32> to vector<1x1x4xf32>
      %74 = vector.broadcast %73 : vector<1x1x4xf32> to vector<1x16x4xf32>
      %75 = arith.mulf %72, %74 : vector<1x16x4xf32>
      %76 = arith.addf %68, %75 : vector<1x16x4xf32>
      %c6 = arith.constant 6 : index
      %c0_52 = arith.constant 0 : index
      %77 = vector.load %arg5[%c6, %c0_52] : memref<25x4xf32, #tpu.memory_space<vmem>>, vector<1x4xf32>
      %c1_i32_53 = arith.constant 1 : i32
      %78 = arith.addi %arg10, %c1_i32_53 : i32
      %79 = arith.index_cast %78 : i32 to index
      %c1_54 = arith.constant 1 : index
      %c0_55 = arith.constant 0 : index
      %80 = vector.load %arg8[%79, %c1_54, %c0_55] : memref<20x20x4xf32, #tpu.memory_space<vmem>>, vector<1x16x4xf32>
      %81 = vector.shape_cast %77 : vector<1x4xf32> to vector<1x1x4xf32>
      %82 = vector.broadcast %81 : vector<1x1x4xf32> to vector<1x16x4xf32>
      %83 = arith.mulf %80, %82 : vector<1x16x4xf32>
      %84 = arith.addf %76, %83 : vector<1x16x4xf32>
      %c7 = arith.constant 7 : index
      %c0_56 = arith.constant 0 : index
      %85 = vector.load %arg5[%c7, %c0_56] : memref<25x4xf32, #tpu.memory_space<vmem>>, vector<1x4xf32>
      %c1_i32_57 = arith.constant 1 : i32
      %86 = arith.addi %arg10, %c1_i32_57 : i32
      %87 = arith.index_cast %86 : i32 to index
      %c2_58 = arith.constant 2 : index
      %c0_59 = arith.constant 0 : index
      %88 = vector.load %arg8[%87, %c2_58, %c0_59] : memref<20x20x4xf32, #tpu.memory_space<vmem>>, vector<1x16x4xf32>
      %89 = vector.shape_cast %85 : vector<1x4xf32> to vector<1x1x4xf32>
      %90 = vector.broadcast %89 : vector<1x1x4xf32> to vector<1x16x4xf32>
      %91 = arith.mulf %88, %90 : vector<1x16x4xf32>
      %92 = arith.addf %84, %91 : vector<1x16x4xf32>
      %c8 = arith.constant 8 : index
      %c0_60 = arith.constant 0 : index
      %93 = vector.load %arg5[%c8, %c0_60] : memref<25x4xf32, #tpu.memory_space<vmem>>, vector<1x4xf32>
      %c1_i32_61 = arith.constant 1 : i32
      %94 = arith.addi %arg10, %c1_i32_61 : i32
      %95 = arith.index_cast %94 : i32 to index
      %c3_62 = arith.constant 3 : index
      %c0_63 = arith.constant 0 : index
      %96 = vector.load %arg8[%95, %c3_62, %c0_63] : memref<20x20x4xf32, #tpu.memory_space<vmem>>, vector<1x16x4xf32>
      %97 = vector.shape_cast %93 : vector<1x4xf32> to vector<1x1x4xf32>
      %98 = vector.broadcast %97 : vector<1x1x4xf32> to vector<1x16x4xf32>
      %99 = arith.mulf %96, %98 : vector<1x16x4xf32>
      %100 = arith.addf %92, %99 : vector<1x16x4xf32>
      %c9 = arith.constant 9 : index
      %c0_64 = arith.constant 0 : index
      %101 = vector.load %arg5[%c9, %c0_64] : memref<25x4xf32, #tpu.memory_space<vmem>>, vector<1x4xf32>
      %c1_i32_65 = arith.constant 1 : i32
      %102 = arith.addi %arg10, %c1_i32_65 : i32
      %103 = arith.index_cast %102 : i32 to index
      %c4_66 = arith.constant 4 : index
      %c0_67 = arith.constant 0 : index
      %104 = vector.load %arg8[%103, %c4_66, %c0_67] : memref<20x20x4xf32, #tpu.memory_space<vmem>>, vector<1x16x4xf32>
      %105 = vector.shape_cast %101 : vector<1x4xf32> to vector<1x1x4xf32>
      %106 = vector.broadcast %105 : vector<1x1x4xf32> to vector<1x16x4xf32>
      %107 = arith.mulf %104, %106 : vector<1x16x4xf32>
      %108 = arith.addf %100, %107 : vector<1x16x4xf32>
      %c10 = arith.constant 10 : index
      %c0_68 = arith.constant 0 : index
      %109 = vector.load %arg5[%c10, %c0_68] : memref<25x4xf32, #tpu.memory_space<vmem>>, vector<1x4xf32>
      %c2_i32 = arith.constant 2 : i32
      %110 = arith.addi %arg10, %c2_i32 : i32
      %111 = arith.index_cast %110 : i32 to index
      %c0_69 = arith.constant 0 : index
      %c0_70 = arith.constant 0 : index
      %112 = vector.load %arg8[%111, %c0_69, %c0_70] : memref<20x20x4xf32, #tpu.memory_space<vmem>>, vector<1x16x4xf32>
      %113 = vector.shape_cast %109 : vector<1x4xf32> to vector<1x1x4xf32>
      %114 = vector.broadcast %113 : vector<1x1x4xf32> to vector<1x16x4xf32>
      %115 = arith.mulf %112, %114 : vector<1x16x4xf32>
      %116 = arith.addf %108, %115 : vector<1x16x4xf32>
      %c11 = arith.constant 11 : index
      %c0_71 = arith.constant 0 : index
      %117 = vector.load %arg5[%c11, %c0_71] : memref<25x4xf32, #tpu.memory_space<vmem>>, vector<1x4xf32>
      %c2_i32_72 = arith.constant 2 : i32
      %118 = arith.addi %arg10, %c2_i32_72 : i32
      %119 = arith.index_cast %118 : i32 to index
      %c1_73 = arith.constant 1 : index
      %c0_74 = arith.constant 0 : index
      %120 = vector.load %arg8[%119, %c1_73, %c0_74] : memref<20x20x4xf32, #tpu.memory_space<vmem>>, vector<1x16x4xf32>
      %121 = vector.shape_cast %117 : vector<1x4xf32> to vector<1x1x4xf32>
      %122 = vector.broadcast %121 : vector<1x1x4xf32> to vector<1x16x4xf32>
      %123 = arith.mulf %120, %122 : vector<1x16x4xf32>
      %124 = arith.addf %116, %123 : vector<1x16x4xf32>
      %c12 = arith.constant 12 : index
      %c0_75 = arith.constant 0 : index
      %125 = vector.load %arg5[%c12, %c0_75] : memref<25x4xf32, #tpu.memory_space<vmem>>, vector<1x4xf32>
      %c2_i32_76 = arith.constant 2 : i32
      %126 = arith.addi %arg10, %c2_i32_76 : i32
      %127 = arith.index_cast %126 : i32 to index
      %c2_77 = arith.constant 2 : index
      %c0_78 = arith.constant 0 : index
      %128 = vector.load %arg8[%127, %c2_77, %c0_78] : memref<20x20x4xf32, #tpu.memory_space<vmem>>, vector<1x16x4xf32>
      %129 = vector.shape_cast %125 : vector<1x4xf32> to vector<1x1x4xf32>
      %130 = vector.broadcast %129 : vector<1x1x4xf32> to vector<1x16x4xf32>
      %131 = arith.mulf %128, %130 : vector<1x16x4xf32>
      %132 = arith.addf %124, %131 : vector<1x16x4xf32>
      %c13 = arith.constant 13 : index
      %c0_79 = arith.constant 0 : index
      %133 = vector.load %arg5[%c13, %c0_79] : memref<25x4xf32, #tpu.memory_space<vmem>>, vector<1x4xf32>
      %c2_i32_80 = arith.constant 2 : i32
      %134 = arith.addi %arg10, %c2_i32_80 : i32
      %135 = arith.index_cast %134 : i32 to index
      %c3_81 = arith.constant 3 : index
      %c0_82 = arith.constant 0 : index
      %136 = vector.load %arg8[%135, %c3_81, %c0_82] : memref<20x20x4xf32, #tpu.memory_space<vmem>>, vector<1x16x4xf32>
      %137 = vector.shape_cast %133 : vector<1x4xf32> to vector<1x1x4xf32>
      %138 = vector.broadcast %137 : vector<1x1x4xf32> to vector<1x16x4xf32>
      %139 = arith.mulf %136, %138 : vector<1x16x4xf32>
      %140 = arith.addf %132, %139 : vector<1x16x4xf32>
      %c14 = arith.constant 14 : index
      %c0_83 = arith.constant 0 : index
      %141 = vector.load %arg5[%c14, %c0_83] : memref<25x4xf32, #tpu.memory_space<vmem>>, vector<1x4xf32>
      %c2_i32_84 = arith.constant 2 : i32
      %142 = arith.addi %arg10, %c2_i32_84 : i32
      %143 = arith.index_cast %142 : i32 to index
      %c4_85 = arith.constant 4 : index
      %c0_86 = arith.constant 0 : index
      %144 = vector.load %arg8[%143, %c4_85, %c0_86] : memref<20x20x4xf32, #tpu.memory_space<vmem>>, vector<1x16x4xf32>
      %145 = vector.shape_cast %141 : vector<1x4xf32> to vector<1x1x4xf32>
      %146 = vector.broadcast %145 : vector<1x1x4xf32> to vector<1x16x4xf32>
      %147 = arith.mulf %144, %146 : vector<1x16x4xf32>
      %148 = arith.addf %140, %147 : vector<1x16x4xf32>
      %c15 = arith.constant 15 : index
      %c0_87 = arith.constant 0 : index
      %149 = vector.load %arg5[%c15, %c0_87] : memref<25x4xf32, #tpu.memory_space<vmem>>, vector<1x4xf32>
      %c3_i32 = arith.constant 3 : i32
      %150 = arith.addi %arg10, %c3_i32 : i32
      %151 = arith.index_cast %150 : i32 to index
      %c0_88 = arith.constant 0 : index
      %c0_89 = arith.constant 0 : index
      %152 = vector.load %arg8[%151, %c0_88, %c0_89] : memref<20x20x4xf32, #tpu.memory_space<vmem>>, vector<1x16x4xf32>
      %153 = vector.shape_cast %149 : vector<1x4xf32> to vector<1x1x4xf32>
      %154 = vector.broadcast %153 : vector<1x1x4xf32> to vector<1x16x4xf32>
      %155 = arith.mulf %152, %154 : vector<1x16x4xf32>
      %156 = arith.addf %148, %155 : vector<1x16x4xf32>
      %c16 = arith.constant 16 : index
      %c0_90 = arith.constant 0 : index
      %157 = vector.load %arg5[%c16, %c0_90] : memref<25x4xf32, #tpu.memory_space<vmem>>, vector<1x4xf32>
      %c3_i32_91 = arith.constant 3 : i32
      %158 = arith.addi %arg10, %c3_i32_91 : i32
      %159 = arith.index_cast %158 : i32 to index
      %c1_92 = arith.constant 1 : index
      %c0_93 = arith.constant 0 : index
      %160 = vector.load %arg8[%159, %c1_92, %c0_93] : memref<20x20x4xf32, #tpu.memory_space<vmem>>, vector<1x16x4xf32>
      %161 = vector.shape_cast %157 : vector<1x4xf32> to vector<1x1x4xf32>
      %162 = vector.broadcast %161 : vector<1x1x4xf32> to vector<1x16x4xf32>
      %163 = arith.mulf %160, %162 : vector<1x16x4xf32>
      %164 = arith.addf %156, %163 : vector<1x16x4xf32>
      %c17 = arith.constant 17 : index
      %c0_94 = arith.constant 0 : index
      %165 = vector.load %arg5[%c17, %c0_94] : memref<25x4xf32, #tpu.memory_space<vmem>>, vector<1x4xf32>
      %c3_i32_95 = arith.constant 3 : i32
      %166 = arith.addi %arg10, %c3_i32_95 : i32
      %167 = arith.index_cast %166 : i32 to index
      %c2_96 = arith.constant 2 : index
      %c0_97 = arith.constant 0 : index
      %168 = vector.load %arg8[%167, %c2_96, %c0_97] : memref<20x20x4xf32, #tpu.memory_space<vmem>>, vector<1x16x4xf32>
      %169 = vector.shape_cast %165 : vector<1x4xf32> to vector<1x1x4xf32>
      %170 = vector.broadcast %169 : vector<1x1x4xf32> to vector<1x16x4xf32>
      %171 = arith.mulf %168, %170 : vector<1x16x4xf32>
      %172 = arith.addf %164, %171 : vector<1x16x4xf32>
      %c18 = arith.constant 18 : index
      %c0_98 = arith.constant 0 : index
      %173 = vector.load %arg5[%c18, %c0_98] : memref<25x4xf32, #tpu.memory_space<vmem>>, vector<1x4xf32>
      %c3_i32_99 = arith.constant 3 : i32
      %174 = arith.addi %arg10, %c3_i32_99 : i32
      %175 = arith.index_cast %174 : i32 to index
      %c3_100 = arith.constant 3 : index
      %c0_101 = arith.constant 0 : index
      %176 = vector.load %arg8[%175, %c3_100, %c0_101] : memref<20x20x4xf32, #tpu.memory_space<vmem>>, vector<1x16x4xf32>
      %177 = vector.shape_cast %173 : vector<1x4xf32> to vector<1x1x4xf32>
      %178 = vector.broadcast %177 : vector<1x1x4xf32> to vector<1x16x4xf32>
      %179 = arith.mulf %176, %178 : vector<1x16x4xf32>
      %180 = arith.addf %172, %179 : vector<1x16x4xf32>
      %c19 = arith.constant 19 : index
      %c0_102 = arith.constant 0 : index
      %181 = vector.load %arg5[%c19, %c0_102] : memref<25x4xf32, #tpu.memory_space<vmem>>, vector<1x4xf32>
      %c3_i32_103 = arith.constant 3 : i32
      %182 = arith.addi %arg10, %c3_i32_103 : i32
      %183 = arith.index_cast %182 : i32 to index
      %c4_104 = arith.constant 4 : index
      %c0_105 = arith.constant 0 : index
      %184 = vector.load %arg8[%183, %c4_104, %c0_105] : memref<20x20x4xf32, #tpu.memory_space<vmem>>, vector<1x16x4xf32>
      %185 = vector.shape_cast %181 : vector<1x4xf32> to vector<1x1x4xf32>
      %186 = vector.broadcast %185 : vector<1x1x4xf32> to vector<1x16x4xf32>
      %187 = arith.mulf %184, %186 : vector<1x16x4xf32>
      %188 = arith.addf %180, %187 : vector<1x16x4xf32>
      %c20 = arith.constant 20 : index
      %c0_106 = arith.constant 0 : index
      %189 = vector.load %arg5[%c20, %c0_106] : memref<25x4xf32, #tpu.memory_space<vmem>>, vector<1x4xf32>
      %c4_i32 = arith.constant 4 : i32
      %190 = arith.addi %arg10, %c4_i32 : i32
      %191 = arith.index_cast %190 : i32 to index
      %c0_107 = arith.constant 0 : index
      %c0_108 = arith.constant 0 : index
      %192 = vector.load %arg8[%191, %c0_107, %c0_108] : memref<20x20x4xf32, #tpu.memory_space<vmem>>, vector<1x16x4xf32>
      %193 = vector.shape_cast %189 : vector<1x4xf32> to vector<1x1x4xf32>
      %194 = vector.broadcast %193 : vector<1x1x4xf32> to vector<1x16x4xf32>
      %195 = arith.mulf %192, %194 : vector<1x16x4xf32>
      %196 = arith.addf %188, %195 : vector<1x16x4xf32>
      %c21 = arith.constant 21 : index
      %c0_109 = arith.constant 0 : index
      %197 = vector.load %arg5[%c21, %c0_109] : memref<25x4xf32, #tpu.memory_space<vmem>>, vector<1x4xf32>
      %c4_i32_110 = arith.constant 4 : i32
      %198 = arith.addi %arg10, %c4_i32_110 : i32
      %199 = arith.index_cast %198 : i32 to index
      %c1_111 = arith.constant 1 : index
      %c0_112 = arith.constant 0 : index
      %200 = vector.load %arg8[%199, %c1_111, %c0_112] : memref<20x20x4xf32, #tpu.memory_space<vmem>>, vector<1x16x4xf32>
      %201 = vector.shape_cast %197 : vector<1x4xf32> to vector<1x1x4xf32>
      %202 = vector.broadcast %201 : vector<1x1x4xf32> to vector<1x16x4xf32>
      %203 = arith.mulf %200, %202 : vector<1x16x4xf32>
      %204 = arith.addf %196, %203 : vector<1x16x4xf32>
      %c22 = arith.constant 22 : index
      %c0_113 = arith.constant 0 : index
      %205 = vector.load %arg5[%c22, %c0_113] : memref<25x4xf32, #tpu.memory_space<vmem>>, vector<1x4xf32>
      %c4_i32_114 = arith.constant 4 : i32
      %206 = arith.addi %arg10, %c4_i32_114 : i32
      %207 = arith.index_cast %206 : i32 to index
      %c2_115 = arith.constant 2 : index
      %c0_116 = arith.constant 0 : index
      %208 = vector.load %arg8[%207, %c2_115, %c0_116] : memref<20x20x4xf32, #tpu.memory_space<vmem>>, vector<1x16x4xf32>
      %209 = vector.shape_cast %205 : vector<1x4xf32> to vector<1x1x4xf32>
      %210 = vector.broadcast %209 : vector<1x1x4xf32> to vector<1x16x4xf32>
      %211 = arith.mulf %208, %210 : vector<1x16x4xf32>
      %212 = arith.addf %204, %211 : vector<1x16x4xf32>
      %c23 = arith.constant 23 : index
      %c0_117 = arith.constant 0 : index
      %213 = vector.load %arg5[%c23, %c0_117] : memref<25x4xf32, #tpu.memory_space<vmem>>, vector<1x4xf32>
      %c4_i32_118 = arith.constant 4 : i32
      %214 = arith.addi %arg10, %c4_i32_118 : i32
      %215 = arith.index_cast %214 : i32 to index
      %c3_119 = arith.constant 3 : index
      %c0_120 = arith.constant 0 : index
      %216 = vector.load %arg8[%215, %c3_119, %c0_120] : memref<20x20x4xf32, #tpu.memory_space<vmem>>, vector<1x16x4xf32>
      %217 = vector.shape_cast %213 : vector<1x4xf32> to vector<1x1x4xf32>
      %218 = vector.broadcast %217 : vector<1x1x4xf32> to vector<1x16x4xf32>
      %219 = arith.mulf %216, %218 : vector<1x16x4xf32>
      %220 = arith.addf %212, %219 : vector<1x16x4xf32>
      %c24 = arith.constant 24 : index
      %c0_121 = arith.constant 0 : index
      %221 = vector.load %arg5[%c24, %c0_121] : memref<25x4xf32, #tpu.memory_space<vmem>>, vector<1x4xf32>
      %c4_i32_122 = arith.constant 4 : i32
      %222 = arith.addi %arg10, %c4_i32_122 : i32
      %223 = arith.index_cast %222 : i32 to index
      %c4_123 = arith.constant 4 : index
      %c0_124 = arith.constant 0 : index
      %224 = vector.load %arg8[%223, %c4_123, %c0_124] : memref<20x20x4xf32, #tpu.memory_space<vmem>>, vector<1x16x4xf32>
      %225 = vector.shape_cast %221 : vector<1x4xf32> to vector<1x1x4xf32>
      %226 = vector.broadcast %225 : vector<1x1x4xf32> to vector<1x16x4xf32>
      %227 = arith.mulf %224, %226 : vector<1x16x4xf32>
      %228 = arith.addf %220, %227 : vector<1x16x4xf32>
      %c0_125 = arith.constant 0 : index
      %c0_126 = arith.constant 0 : index
      %229 = vector.load %arg6[%c0_125, %c0_126] : memref<1x4xf32, #tpu.memory_space<vmem>>, vector<1x4xf32>
      %230 = vector.shape_cast %229 : vector<1x4xf32> to vector<1x1x4xf32>
      %231 = vector.broadcast %230 : vector<1x1x4xf32> to vector<1x16x4xf32>
      %232 = arith.addf %228, %231 : vector<1x16x4xf32>
      %233 = arith.negf %232 : vector<1x16x4xf32>
      %234 = math.exp %233 : vector<1x16x4xf32>
      %cst_127 = arith.constant 1.000000e+00 : f32
      %235 = vector.broadcast %cst_127 : f32 to vector<1x16x4xf32>
      %236 = arith.addf %235, %234 : vector<1x16x4xf32>
      %237 = arith.divf %235, %236 : vector<1x16x4xf32>
      %238 = arith.mulf %232, %237 : vector<1x16x4xf32>
      %239 = arith.index_cast %arg10 : i32 to index
      %c0_128 = arith.constant 0 : index
      %c0_129 = arith.constant 0 : index
      %240 = vector.load %arg9[%239, %c0_128, %c0_129] : memref<16x16x4xf32, #tpu.memory_space<vmem>>, vector<1x16x4xf32>
      tpu.vector_store %arg9[%239, %c0_128, %c0_129], %238 {strides = array<i32>} : memref<16x16x4xf32, #tpu.memory_space<vmem>>, vector<1x16x4xf32>,
    }
    %c16_i32_17 = arith.constant 16 : i32
    %c0_18 = arith.constant 0 : index
    %c0_19 = arith.constant 0 : index
    %c0_20 = arith.constant 0 : index
    %22 = vector.load %arg9[%c0_18, %c0_19, %c0_20] : memref<16x16x4xf32, #tpu.memory_space<vmem>>, vector<16x16x4xf32>
    %23 = vector.shape_cast %22 : vector<16x16x4xf32> to vector<256x4xf32>
    %24 = tpu.transpose %23, [1, 0] : vector<256x4xf32> -> vector<4x256xf32>
    %c0_21 = arith.constant 0 : index
    %c1 = arith.constant 1 : index
    %c0_22 = arith.constant 0 : index
    %c0_23 = arith.constant 0 : index
    %25 = vector.load %arg7[%c0_21, %c1, %c0_22, %c0_23] : memref<1x2x4x256xf32, #tpu.memory_space<vmem>>, vector<1x1x4x256xf32>
    %26 = vector.shape_cast %25 : vector<1x1x4x256xf32> to vector<4x256xf32>
    %27 = vector.shape_cast %24 : vector<4x256xf32> to vector<1x1x4x256xf32>
    tpu.vector_store %arg7[%c0_21, %c1, %c0_22, %c0_23], %27 {strides = array<i32>} : memref<1x2x4x256xf32, #tpu.memory_space<vmem>>, vector<1x1x4x256xf32>,
    return
  }
  func.func @transform_0(%arg0: i32, %arg1: i32) -> (i32, i32, i32) {
    %c0_i32 = arith.constant 0 : i32
    %c0_i32_0 = arith.constant 0 : i32
    %c0_i32_1 = arith.constant 0 : i32
    return %arg0, %c0_i32, %c0_i32_0 : i32, i32, i32
  }
  func.func @transform_1(%arg0: i32, %arg1: i32) -> (i32, i32) {
    %c0_i32 = arith.constant 0 : i32
    %c0_i32_0 = arith.constant 0 : i32
    return %arg1, %c0_i32 : i32, i32
  }
  func.func @transform_2(%arg0: i32, %arg1: i32) -> (i32, i32) {
    %c0_i32 = arith.constant 0 : i32
    %c0_i32_0 = arith.constant 0 : i32
    return %arg1, %c0_i32 : i32, i32
  }
  func.func @transform_3(%arg0: i32, %arg1: i32) -> (i32, i32) {
    %c0_i32 = arith.constant 0 : i32
    %c0_i32_0 = arith.constant 0 : i32
    return %c0_i32, %arg1 : i32, i32
  }
  func.func @transform_4(%arg0: i32, %arg1: i32) -> (i32, i32) {
    %c0_i32 = arith.constant 0 : i32
    %c0_i32_0 = arith.constant 0 : i32
    return %c0_i32, %arg1 : i32, i32
  }
  func.func @transform_5(%arg0: i32, %arg1: i32) -> (i32, i32, i32, i32) {
    %c0_i32 = arith.constant 0 : i32
    %c0_i32_0 = arith.constant 0 : i32
    %c0_i32_1 = arith.constant 0 : i32
    return %arg0, %c0_i32, %arg1, %c0_i32_0 : i32, i32, i32, i32
  }
}

module attributes {stable_mosaic.version = 11 : i64} {
  func.func @_ghost_conv_kernel(%arg0: i32, %arg1: i32, %arg2: memref<1x8x256xf32, #tpu.memory_space<vmem>>, %arg3: memref<8x8xf32, #tpu.memory_space<vmem>>, %arg4: memref<8x1xf32, #tpu.memory_space<vmem>>, %arg5: memref<25x8xf32, #tpu.memory_space<vmem>>, %arg6: memref<1x8xf32, #tpu.memory_space<vmem>>, %arg7: memref<1x2x8x256xf32, #tpu.memory_space<vmem>>, %arg8: memref<1x2x8x256xf32, #tpu.memory_space<vmem>>, %arg9: memref<20x20x8xf32, #tpu.memory_space<vmem>>, %arg10: memref<16x16x8xf32, #tpu.memory_space<vmem>>) attributes {dimension_semantics = [#tpu.dimension_semantics<parallel>, #tpu.dimension_semantics<parallel>], iteration_bounds = array<i64: 2, 1>, scalar_prefetch = 0 : i64, scratch_operands = 2 : i64, tpu.core_type = #tpu.core_type<tc>, window_params = [{transform_indices = @transform_0, window_bounds = array<i64: 1, 8, 256>}, {transform_indices = @transform_1, window_bounds = array<i64: 8, 8>}, {transform_indices = @transform_2, window_bounds = array<i64: 8, 1>}, {transform_indices = @transform_3, window_bounds = array<i64: 25, 8>}, {transform_indices = @transform_4, window_bounds = array<i64: 1, 8>}, {transform_indices = @transform_5, window_bounds = array<i64: 1, 2, 8, 256>}, {transform_indices = @transform_6, window_bounds = array<i64: 1, 2, 8, 256>}]} {
    %c0 = arith.constant 0 : index
    %c0_0 = arith.constant 0 : index
    %c0_1 = arith.constant 0 : index
    %0 = vector.load %arg2[%c0, %c0_0, %c0_1] : memref<1x8x256xf32, #tpu.memory_space<vmem>>, vector<1x8x256xf32>
    %1 = vector.shape_cast %0 : vector<1x8x256xf32> to vector<8x256xf32>
    %c0_2 = arith.constant 0 : index
    %c0_3 = arith.constant 0 : index
    %2 = vector.load %arg3[%c0_2, %c0_3] : memref<8x8xf32, #tpu.memory_space<vmem>>, vector<8x8xf32>
    %cst = arith.constant dense<0.000000e+00> : vector<8x256xf32>
    %3 = tpu.matmul %2, %1, %cst {dimension_numbers = #tpu.dot_dimension_numbers<[1], [0], [0], [1], [0, 0, 1, 1], [], []>} : vector<8x8xf32>, vector<8x256xf32>, vector<8x256xf32> -> vector<8x256xf32>
    %c0_4 = arith.constant 0 : index
    %c0_5 = arith.constant 0 : index
    %4 = vector.load %arg4[%c0_4, %c0_5] : memref<8x1xf32, #tpu.memory_space<vmem>>, vector<8x1xf32>
    %5 = vector.broadcast %4 : vector<8x1xf32> to vector<8x256xf32>
    %6 = arith.addf %3, %5 : vector<8x256xf32>
    %c0_6 = arith.constant 0 : index
    %c0_7 = arith.constant 0 : index
    %c0_8 = arith.constant 0 : index
    %c0_9 = arith.constant 0 : index
    %7 = vector.load %arg7[%c0_6, %c0_7, %c0_8, %c0_9] : memref<1x2x8x256xf32, #tpu.memory_space<vmem>>, vector<1x1x8x256xf32>
    %8 = vector.shape_cast %7 : vector<1x1x8x256xf32> to vector<8x256xf32>
    %9 = arith.addf %6, %8 : vector<8x256xf32>
    %c0_10 = arith.constant 0 : index
    %c0_11 = arith.constant 0 : index
    %c0_12 = arith.constant 0 : index
    %c0_13 = arith.constant 0 : index
    %10 = vector.load %arg8[%c0_10, %c0_11, %c0_12, %c0_13] : memref<1x2x8x256xf32, #tpu.memory_space<vmem>>, vector<1x1x8x256xf32>
    %11 = vector.shape_cast %10 : vector<1x1x8x256xf32> to vector<8x256xf32>
    %12 = vector.shape_cast %9 : vector<8x256xf32> to vector<1x1x8x256xf32>
    tpu.vector_store %arg8[%c0_10, %c0_11, %c0_12, %c0_13], %12 {strides = array<i32>} : memref<1x2x8x256xf32, #tpu.memory_space<vmem>>, vector<1x1x8x256xf32>,
    %cst_14 = arith.constant 0.000000e+00 : f32
    %13 = vector.broadcast %cst_14 : f32 to vector<20x20x8xf32>
    %c0_15 = arith.constant 0 : index
    %c0_16 = arith.constant 0 : index
    %c0_17 = arith.constant 0 : index
    %14 = vector.load %arg9[%c0_15, %c0_16, %c0_17] : memref<20x20x8xf32, #tpu.memory_space<vmem>>, vector<20x20x8xf32>
    tpu.vector_store %arg9[%c0_15, %c0_16, %c0_17], %13 {strides = array<i32>} : memref<20x20x8xf32, #tpu.memory_space<vmem>>, vector<20x20x8xf32>,
    %15 = tpu.transpose %6, [1, 0] : vector<8x256xf32> -> vector<256x8xf32>
    %16 = vector.shape_cast %15 : vector<256x8xf32> to vector<16x16x8xf32>
    %c2 = arith.constant 2 : index
    %c2_18 = arith.constant 2 : index
    %c0_19 = arith.constant 0 : index
    %17 = vector.load %arg9[%c2, %c2_18, %c0_19] : memref<20x20x8xf32, #tpu.memory_space<vmem>>, vector<16x16x8xf32>
    tpu.vector_store %arg9[%c2, %c2_18, %c0_19], %16 {strides = array<i32>} : memref<20x20x8xf32, #tpu.memory_space<vmem>>, vector<16x16x8xf32>,
    %c0_i32 = arith.constant 0 : i32
    %c16_i32 = arith.constant 16 : i32
    %18 = arith.addi %c0_i32, %c16_i32 : i32
    %c1_i32 = arith.constant 1 : i32
    scf.for %arg11 = %c0_i32 to %18 step %c1_i32  : i32 {
      %cst_31 = arith.constant 0.000000e+00 : f32
      %28 = vector.broadcast %cst_31 : f32 to vector<1x16x8xf32>
      %c0_32 = arith.constant 0 : index
      %c0_33 = arith.constant 0 : index
      %29 = vector.load %arg5[%c0_32, %c0_33] : memref<25x8xf32, #tpu.memory_space<vmem>>, vector<1x8xf32>
      %c0_i32_34 = arith.constant 0 : i32
      %30 = arith.addi %arg11, %c0_i32_34 : i32
      %31 = arith.index_cast %30 : i32 to index
      %c0_35 = arith.constant 0 : index
      %c0_36 = arith.constant 0 : index
      %32 = vector.load %arg9[%31, %c0_35, %c0_36] : memref<20x20x8xf32, #tpu.memory_space<vmem>>, vector<1x16x8xf32>
      %33 = vector.shape_cast %29 : vector<1x8xf32> to vector<1x1x8xf32>
      %34 = vector.broadcast %33 : vector<1x1x8xf32> to vector<1x16x8xf32>
      %35 = arith.mulf %32, %34 : vector<1x16x8xf32>
      %36 = arith.addf %28, %35 : vector<1x16x8xf32>
      %c1_37 = arith.constant 1 : index
      %c0_38 = arith.constant 0 : index
      %37 = vector.load %arg5[%c1_37, %c0_38] : memref<25x8xf32, #tpu.memory_space<vmem>>, vector<1x8xf32>
      %c0_i32_39 = arith.constant 0 : i32
      %38 = arith.addi %arg11, %c0_i32_39 : i32
      %39 = arith.index_cast %38 : i32 to index
      %c1_40 = arith.constant 1 : index
      %c0_41 = arith.constant 0 : index
      %40 = vector.load %arg9[%39, %c1_40, %c0_41] : memref<20x20x8xf32, #tpu.memory_space<vmem>>, vector<1x16x8xf32>
      %41 = vector.shape_cast %37 : vector<1x8xf32> to vector<1x1x8xf32>
      %42 = vector.broadcast %41 : vector<1x1x8xf32> to vector<1x16x8xf32>
      %43 = arith.mulf %40, %42 : vector<1x16x8xf32>
      %44 = arith.addf %36, %43 : vector<1x16x8xf32>
      %c2_42 = arith.constant 2 : index
      %c0_43 = arith.constant 0 : index
      %45 = vector.load %arg5[%c2_42, %c0_43] : memref<25x8xf32, #tpu.memory_space<vmem>>, vector<1x8xf32>
      %c0_i32_44 = arith.constant 0 : i32
      %46 = arith.addi %arg11, %c0_i32_44 : i32
      %47 = arith.index_cast %46 : i32 to index
      %c2_45 = arith.constant 2 : index
      %c0_46 = arith.constant 0 : index
      %48 = vector.load %arg9[%47, %c2_45, %c0_46] : memref<20x20x8xf32, #tpu.memory_space<vmem>>, vector<1x16x8xf32>
      %49 = vector.shape_cast %45 : vector<1x8xf32> to vector<1x1x8xf32>
      %50 = vector.broadcast %49 : vector<1x1x8xf32> to vector<1x16x8xf32>
      %51 = arith.mulf %48, %50 : vector<1x16x8xf32>
      %52 = arith.addf %44, %51 : vector<1x16x8xf32>
      %c3 = arith.constant 3 : index
      %c0_47 = arith.constant 0 : index
      %53 = vector.load %arg5[%c3, %c0_47] : memref<25x8xf32, #tpu.memory_space<vmem>>, vector<1x8xf32>
      %c0_i32_48 = arith.constant 0 : i32
      %54 = arith.addi %arg11, %c0_i32_48 : i32
      %55 = arith.index_cast %54 : i32 to index
      %c3_49 = arith.constant 3 : index
      %c0_50 = arith.constant 0 : index
      %56 = vector.load %arg9[%55, %c3_49, %c0_50] : memref<20x20x8xf32, #tpu.memory_space<vmem>>, vector<1x16x8xf32>
      %57 = vector.shape_cast %53 : vector<1x8xf32> to vector<1x1x8xf32>
      %58 = vector.broadcast %57 : vector<1x1x8xf32> to vector<1x16x8xf32>
      %59 = arith.mulf %56, %58 : vector<1x16x8xf32>
      %60 = arith.addf %52, %59 : vector<1x16x8xf32>
      %c4 = arith.constant 4 : index
      %c0_51 = arith.constant 0 : index
      %61 = vector.load %arg5[%c4, %c0_51] : memref<25x8xf32, #tpu.memory_space<vmem>>, vector<1x8xf32>
      %c0_i32_52 = arith.constant 0 : i32
      %62 = arith.addi %arg11, %c0_i32_52 : i32
      %63 = arith.index_cast %62 : i32 to index
      %c4_53 = arith.constant 4 : index
      %c0_54 = arith.constant 0 : index
      %64 = vector.load %arg9[%63, %c4_53, %c0_54] : memref<20x20x8xf32, #tpu.memory_space<vmem>>, vector<1x16x8xf32>
      %65 = vector.shape_cast %61 : vector<1x8xf32> to vector<1x1x8xf32>
      %66 = vector.broadcast %65 : vector<1x1x8xf32> to vector<1x16x8xf32>
      %67 = arith.mulf %64, %66 : vector<1x16x8xf32>
      %68 = arith.addf %60, %67 : vector<1x16x8xf32>
      %c5 = arith.constant 5 : index
      %c0_55 = arith.constant 0 : index
      %69 = vector.load %arg5[%c5, %c0_55] : memref<25x8xf32, #tpu.memory_space<vmem>>, vector<1x8xf32>
      %c1_i32_56 = arith.constant 1 : i32
      %70 = arith.addi %arg11, %c1_i32_56 : i32
      %71 = arith.index_cast %70 : i32 to index
      %c0_57 = arith.constant 0 : index
      %c0_58 = arith.constant 0 : index
      %72 = vector.load %arg9[%71, %c0_57, %c0_58] : memref<20x20x8xf32, #tpu.memory_space<vmem>>, vector<1x16x8xf32>
      %73 = vector.shape_cast %69 : vector<1x8xf32> to vector<1x1x8xf32>
      %74 = vector.broadcast %73 : vector<1x1x8xf32> to vector<1x16x8xf32>
      %75 = arith.mulf %72, %74 : vector<1x16x8xf32>
      %76 = arith.addf %68, %75 : vector<1x16x8xf32>
      %c6 = arith.constant 6 : index
      %c0_59 = arith.constant 0 : index
      %77 = vector.load %arg5[%c6, %c0_59] : memref<25x8xf32, #tpu.memory_space<vmem>>, vector<1x8xf32>
      %c1_i32_60 = arith.constant 1 : i32
      %78 = arith.addi %arg11, %c1_i32_60 : i32
      %79 = arith.index_cast %78 : i32 to index
      %c1_61 = arith.constant 1 : index
      %c0_62 = arith.constant 0 : index
      %80 = vector.load %arg9[%79, %c1_61, %c0_62] : memref<20x20x8xf32, #tpu.memory_space<vmem>>, vector<1x16x8xf32>
      %81 = vector.shape_cast %77 : vector<1x8xf32> to vector<1x1x8xf32>
      %82 = vector.broadcast %81 : vector<1x1x8xf32> to vector<1x16x8xf32>
      %83 = arith.mulf %80, %82 : vector<1x16x8xf32>
      %84 = arith.addf %76, %83 : vector<1x16x8xf32>
      %c7 = arith.constant 7 : index
      %c0_63 = arith.constant 0 : index
      %85 = vector.load %arg5[%c7, %c0_63] : memref<25x8xf32, #tpu.memory_space<vmem>>, vector<1x8xf32>
      %c1_i32_64 = arith.constant 1 : i32
      %86 = arith.addi %arg11, %c1_i32_64 : i32
      %87 = arith.index_cast %86 : i32 to index
      %c2_65 = arith.constant 2 : index
      %c0_66 = arith.constant 0 : index
      %88 = vector.load %arg9[%87, %c2_65, %c0_66] : memref<20x20x8xf32, #tpu.memory_space<vmem>>, vector<1x16x8xf32>
      %89 = vector.shape_cast %85 : vector<1x8xf32> to vector<1x1x8xf32>
      %90 = vector.broadcast %89 : vector<1x1x8xf32> to vector<1x16x8xf32>
      %91 = arith.mulf %88, %90 : vector<1x16x8xf32>
      %92 = arith.addf %84, %91 : vector<1x16x8xf32>
      %c8 = arith.constant 8 : index
      %c0_67 = arith.constant 0 : index
      %93 = vector.load %arg5[%c8, %c0_67] : memref<25x8xf32, #tpu.memory_space<vmem>>, vector<1x8xf32>
      %c1_i32_68 = arith.constant 1 : i32
      %94 = arith.addi %arg11, %c1_i32_68 : i32
      %95 = arith.index_cast %94 : i32 to index
      %c3_69 = arith.constant 3 : index
      %c0_70 = arith.constant 0 : index
      %96 = vector.load %arg9[%95, %c3_69, %c0_70] : memref<20x20x8xf32, #tpu.memory_space<vmem>>, vector<1x16x8xf32>
      %97 = vector.shape_cast %93 : vector<1x8xf32> to vector<1x1x8xf32>
      %98 = vector.broadcast %97 : vector<1x1x8xf32> to vector<1x16x8xf32>
      %99 = arith.mulf %96, %98 : vector<1x16x8xf32>
      %100 = arith.addf %92, %99 : vector<1x16x8xf32>
      %c9 = arith.constant 9 : index
      %c0_71 = arith.constant 0 : index
      %101 = vector.load %arg5[%c9, %c0_71] : memref<25x8xf32, #tpu.memory_space<vmem>>, vector<1x8xf32>
      %c1_i32_72 = arith.constant 1 : i32
      %102 = arith.addi %arg11, %c1_i32_72 : i32
      %103 = arith.index_cast %102 : i32 to index
      %c4_73 = arith.constant 4 : index
      %c0_74 = arith.constant 0 : index
      %104 = vector.load %arg9[%103, %c4_73, %c0_74] : memref<20x20x8xf32, #tpu.memory_space<vmem>>, vector<1x16x8xf32>
      %105 = vector.shape_cast %101 : vector<1x8xf32> to vector<1x1x8xf32>
      %106 = vector.broadcast %105 : vector<1x1x8xf32> to vector<1x16x8xf32>
      %107 = arith.mulf %104, %106 : vector<1x16x8xf32>
      %108 = arith.addf %100, %107 : vector<1x16x8xf32>
      %c10 = arith.constant 10 : index
      %c0_75 = arith.constant 0 : index
      %109 = vector.load %arg5[%c10, %c0_75] : memref<25x8xf32, #tpu.memory_space<vmem>>, vector<1x8xf32>
      %c2_i32 = arith.constant 2 : i32
      %110 = arith.addi %arg11, %c2_i32 : i32
      %111 = arith.index_cast %110 : i32 to index
      %c0_76 = arith.constant 0 : index
      %c0_77 = arith.constant 0 : index
      %112 = vector.load %arg9[%111, %c0_76, %c0_77] : memref<20x20x8xf32, #tpu.memory_space<vmem>>, vector<1x16x8xf32>
      %113 = vector.shape_cast %109 : vector<1x8xf32> to vector<1x1x8xf32>
      %114 = vector.broadcast %113 : vector<1x1x8xf32> to vector<1x16x8xf32>
      %115 = arith.mulf %112, %114 : vector<1x16x8xf32>
      %116 = arith.addf %108, %115 : vector<1x16x8xf32>
      %c11 = arith.constant 11 : index
      %c0_78 = arith.constant 0 : index
      %117 = vector.load %arg5[%c11, %c0_78] : memref<25x8xf32, #tpu.memory_space<vmem>>, vector<1x8xf32>
      %c2_i32_79 = arith.constant 2 : i32
      %118 = arith.addi %arg11, %c2_i32_79 : i32
      %119 = arith.index_cast %118 : i32 to index
      %c1_80 = arith.constant 1 : index
      %c0_81 = arith.constant 0 : index
      %120 = vector.load %arg9[%119, %c1_80, %c0_81] : memref<20x20x8xf32, #tpu.memory_space<vmem>>, vector<1x16x8xf32>
      %121 = vector.shape_cast %117 : vector<1x8xf32> to vector<1x1x8xf32>
      %122 = vector.broadcast %121 : vector<1x1x8xf32> to vector<1x16x8xf32>
      %123 = arith.mulf %120, %122 : vector<1x16x8xf32>
      %124 = arith.addf %116, %123 : vector<1x16x8xf32>
      %c12 = arith.constant 12 : index
      %c0_82 = arith.constant 0 : index
      %125 = vector.load %arg5[%c12, %c0_82] : memref<25x8xf32, #tpu.memory_space<vmem>>, vector<1x8xf32>
      %c2_i32_83 = arith.constant 2 : i32
      %126 = arith.addi %arg11, %c2_i32_83 : i32
      %127 = arith.index_cast %126 : i32 to index
      %c2_84 = arith.constant 2 : index
      %c0_85 = arith.constant 0 : index
      %128 = vector.load %arg9[%127, %c2_84, %c0_85] : memref<20x20x8xf32, #tpu.memory_space<vmem>>, vector<1x16x8xf32>
      %129 = vector.shape_cast %125 : vector<1x8xf32> to vector<1x1x8xf32>
      %130 = vector.broadcast %129 : vector<1x1x8xf32> to vector<1x16x8xf32>
      %131 = arith.mulf %128, %130 : vector<1x16x8xf32>
      %132 = arith.addf %124, %131 : vector<1x16x8xf32>
      %c13 = arith.constant 13 : index
      %c0_86 = arith.constant 0 : index
      %133 = vector.load %arg5[%c13, %c0_86] : memref<25x8xf32, #tpu.memory_space<vmem>>, vector<1x8xf32>
      %c2_i32_87 = arith.constant 2 : i32
      %134 = arith.addi %arg11, %c2_i32_87 : i32
      %135 = arith.index_cast %134 : i32 to index
      %c3_88 = arith.constant 3 : index
      %c0_89 = arith.constant 0 : index
      %136 = vector.load %arg9[%135, %c3_88, %c0_89] : memref<20x20x8xf32, #tpu.memory_space<vmem>>, vector<1x16x8xf32>
      %137 = vector.shape_cast %133 : vector<1x8xf32> to vector<1x1x8xf32>
      %138 = vector.broadcast %137 : vector<1x1x8xf32> to vector<1x16x8xf32>
      %139 = arith.mulf %136, %138 : vector<1x16x8xf32>
      %140 = arith.addf %132, %139 : vector<1x16x8xf32>
      %c14 = arith.constant 14 : index
      %c0_90 = arith.constant 0 : index
      %141 = vector.load %arg5[%c14, %c0_90] : memref<25x8xf32, #tpu.memory_space<vmem>>, vector<1x8xf32>
      %c2_i32_91 = arith.constant 2 : i32
      %142 = arith.addi %arg11, %c2_i32_91 : i32
      %143 = arith.index_cast %142 : i32 to index
      %c4_92 = arith.constant 4 : index
      %c0_93 = arith.constant 0 : index
      %144 = vector.load %arg9[%143, %c4_92, %c0_93] : memref<20x20x8xf32, #tpu.memory_space<vmem>>, vector<1x16x8xf32>
      %145 = vector.shape_cast %141 : vector<1x8xf32> to vector<1x1x8xf32>
      %146 = vector.broadcast %145 : vector<1x1x8xf32> to vector<1x16x8xf32>
      %147 = arith.mulf %144, %146 : vector<1x16x8xf32>
      %148 = arith.addf %140, %147 : vector<1x16x8xf32>
      %c15 = arith.constant 15 : index
      %c0_94 = arith.constant 0 : index
      %149 = vector.load %arg5[%c15, %c0_94] : memref<25x8xf32, #tpu.memory_space<vmem>>, vector<1x8xf32>
      %c3_i32 = arith.constant 3 : i32
      %150 = arith.addi %arg11, %c3_i32 : i32
      %151 = arith.index_cast %150 : i32 to index
      %c0_95 = arith.constant 0 : index
      %c0_96 = arith.constant 0 : index
      %152 = vector.load %arg9[%151, %c0_95, %c0_96] : memref<20x20x8xf32, #tpu.memory_space<vmem>>, vector<1x16x8xf32>
      %153 = vector.shape_cast %149 : vector<1x8xf32> to vector<1x1x8xf32>
      %154 = vector.broadcast %153 : vector<1x1x8xf32> to vector<1x16x8xf32>
      %155 = arith.mulf %152, %154 : vector<1x16x8xf32>
      %156 = arith.addf %148, %155 : vector<1x16x8xf32>
      %c16 = arith.constant 16 : index
      %c0_97 = arith.constant 0 : index
      %157 = vector.load %arg5[%c16, %c0_97] : memref<25x8xf32, #tpu.memory_space<vmem>>, vector<1x8xf32>
      %c3_i32_98 = arith.constant 3 : i32
      %158 = arith.addi %arg11, %c3_i32_98 : i32
      %159 = arith.index_cast %158 : i32 to index
      %c1_99 = arith.constant 1 : index
      %c0_100 = arith.constant 0 : index
      %160 = vector.load %arg9[%159, %c1_99, %c0_100] : memref<20x20x8xf32, #tpu.memory_space<vmem>>, vector<1x16x8xf32>
      %161 = vector.shape_cast %157 : vector<1x8xf32> to vector<1x1x8xf32>
      %162 = vector.broadcast %161 : vector<1x1x8xf32> to vector<1x16x8xf32>
      %163 = arith.mulf %160, %162 : vector<1x16x8xf32>
      %164 = arith.addf %156, %163 : vector<1x16x8xf32>
      %c17 = arith.constant 17 : index
      %c0_101 = arith.constant 0 : index
      %165 = vector.load %arg5[%c17, %c0_101] : memref<25x8xf32, #tpu.memory_space<vmem>>, vector<1x8xf32>
      %c3_i32_102 = arith.constant 3 : i32
      %166 = arith.addi %arg11, %c3_i32_102 : i32
      %167 = arith.index_cast %166 : i32 to index
      %c2_103 = arith.constant 2 : index
      %c0_104 = arith.constant 0 : index
      %168 = vector.load %arg9[%167, %c2_103, %c0_104] : memref<20x20x8xf32, #tpu.memory_space<vmem>>, vector<1x16x8xf32>
      %169 = vector.shape_cast %165 : vector<1x8xf32> to vector<1x1x8xf32>
      %170 = vector.broadcast %169 : vector<1x1x8xf32> to vector<1x16x8xf32>
      %171 = arith.mulf %168, %170 : vector<1x16x8xf32>
      %172 = arith.addf %164, %171 : vector<1x16x8xf32>
      %c18 = arith.constant 18 : index
      %c0_105 = arith.constant 0 : index
      %173 = vector.load %arg5[%c18, %c0_105] : memref<25x8xf32, #tpu.memory_space<vmem>>, vector<1x8xf32>
      %c3_i32_106 = arith.constant 3 : i32
      %174 = arith.addi %arg11, %c3_i32_106 : i32
      %175 = arith.index_cast %174 : i32 to index
      %c3_107 = arith.constant 3 : index
      %c0_108 = arith.constant 0 : index
      %176 = vector.load %arg9[%175, %c3_107, %c0_108] : memref<20x20x8xf32, #tpu.memory_space<vmem>>, vector<1x16x8xf32>
      %177 = vector.shape_cast %173 : vector<1x8xf32> to vector<1x1x8xf32>
      %178 = vector.broadcast %177 : vector<1x1x8xf32> to vector<1x16x8xf32>
      %179 = arith.mulf %176, %178 : vector<1x16x8xf32>
      %180 = arith.addf %172, %179 : vector<1x16x8xf32>
      %c19 = arith.constant 19 : index
      %c0_109 = arith.constant 0 : index
      %181 = vector.load %arg5[%c19, %c0_109] : memref<25x8xf32, #tpu.memory_space<vmem>>, vector<1x8xf32>
      %c3_i32_110 = arith.constant 3 : i32
      %182 = arith.addi %arg11, %c3_i32_110 : i32
      %183 = arith.index_cast %182 : i32 to index
      %c4_111 = arith.constant 4 : index
      %c0_112 = arith.constant 0 : index
      %184 = vector.load %arg9[%183, %c4_111, %c0_112] : memref<20x20x8xf32, #tpu.memory_space<vmem>>, vector<1x16x8xf32>
      %185 = vector.shape_cast %181 : vector<1x8xf32> to vector<1x1x8xf32>
      %186 = vector.broadcast %185 : vector<1x1x8xf32> to vector<1x16x8xf32>
      %187 = arith.mulf %184, %186 : vector<1x16x8xf32>
      %188 = arith.addf %180, %187 : vector<1x16x8xf32>
      %c20 = arith.constant 20 : index
      %c0_113 = arith.constant 0 : index
      %189 = vector.load %arg5[%c20, %c0_113] : memref<25x8xf32, #tpu.memory_space<vmem>>, vector<1x8xf32>
      %c4_i32 = arith.constant 4 : i32
      %190 = arith.addi %arg11, %c4_i32 : i32
      %191 = arith.index_cast %190 : i32 to index
      %c0_114 = arith.constant 0 : index
      %c0_115 = arith.constant 0 : index
      %192 = vector.load %arg9[%191, %c0_114, %c0_115] : memref<20x20x8xf32, #tpu.memory_space<vmem>>, vector<1x16x8xf32>
      %193 = vector.shape_cast %189 : vector<1x8xf32> to vector<1x1x8xf32>
      %194 = vector.broadcast %193 : vector<1x1x8xf32> to vector<1x16x8xf32>
      %195 = arith.mulf %192, %194 : vector<1x16x8xf32>
      %196 = arith.addf %188, %195 : vector<1x16x8xf32>
      %c21 = arith.constant 21 : index
      %c0_116 = arith.constant 0 : index
      %197 = vector.load %arg5[%c21, %c0_116] : memref<25x8xf32, #tpu.memory_space<vmem>>, vector<1x8xf32>
      %c4_i32_117 = arith.constant 4 : i32
      %198 = arith.addi %arg11, %c4_i32_117 : i32
      %199 = arith.index_cast %198 : i32 to index
      %c1_118 = arith.constant 1 : index
      %c0_119 = arith.constant 0 : index
      %200 = vector.load %arg9[%199, %c1_118, %c0_119] : memref<20x20x8xf32, #tpu.memory_space<vmem>>, vector<1x16x8xf32>
      %201 = vector.shape_cast %197 : vector<1x8xf32> to vector<1x1x8xf32>
      %202 = vector.broadcast %201 : vector<1x1x8xf32> to vector<1x16x8xf32>
      %203 = arith.mulf %200, %202 : vector<1x16x8xf32>
      %204 = arith.addf %196, %203 : vector<1x16x8xf32>
      %c22 = arith.constant 22 : index
      %c0_120 = arith.constant 0 : index
      %205 = vector.load %arg5[%c22, %c0_120] : memref<25x8xf32, #tpu.memory_space<vmem>>, vector<1x8xf32>
      %c4_i32_121 = arith.constant 4 : i32
      %206 = arith.addi %arg11, %c4_i32_121 : i32
      %207 = arith.index_cast %206 : i32 to index
      %c2_122 = arith.constant 2 : index
      %c0_123 = arith.constant 0 : index
      %208 = vector.load %arg9[%207, %c2_122, %c0_123] : memref<20x20x8xf32, #tpu.memory_space<vmem>>, vector<1x16x8xf32>
      %209 = vector.shape_cast %205 : vector<1x8xf32> to vector<1x1x8xf32>
      %210 = vector.broadcast %209 : vector<1x1x8xf32> to vector<1x16x8xf32>
      %211 = arith.mulf %208, %210 : vector<1x16x8xf32>
      %212 = arith.addf %204, %211 : vector<1x16x8xf32>
      %c23 = arith.constant 23 : index
      %c0_124 = arith.constant 0 : index
      %213 = vector.load %arg5[%c23, %c0_124] : memref<25x8xf32, #tpu.memory_space<vmem>>, vector<1x8xf32>
      %c4_i32_125 = arith.constant 4 : i32
      %214 = arith.addi %arg11, %c4_i32_125 : i32
      %215 = arith.index_cast %214 : i32 to index
      %c3_126 = arith.constant 3 : index
      %c0_127 = arith.constant 0 : index
      %216 = vector.load %arg9[%215, %c3_126, %c0_127] : memref<20x20x8xf32, #tpu.memory_space<vmem>>, vector<1x16x8xf32>
      %217 = vector.shape_cast %213 : vector<1x8xf32> to vector<1x1x8xf32>
      %218 = vector.broadcast %217 : vector<1x1x8xf32> to vector<1x16x8xf32>
      %219 = arith.mulf %216, %218 : vector<1x16x8xf32>
      %220 = arith.addf %212, %219 : vector<1x16x8xf32>
      %c24 = arith.constant 24 : index
      %c0_128 = arith.constant 0 : index
      %221 = vector.load %arg5[%c24, %c0_128] : memref<25x8xf32, #tpu.memory_space<vmem>>, vector<1x8xf32>
      %c4_i32_129 = arith.constant 4 : i32
      %222 = arith.addi %arg11, %c4_i32_129 : i32
      %223 = arith.index_cast %222 : i32 to index
      %c4_130 = arith.constant 4 : index
      %c0_131 = arith.constant 0 : index
      %224 = vector.load %arg9[%223, %c4_130, %c0_131] : memref<20x20x8xf32, #tpu.memory_space<vmem>>, vector<1x16x8xf32>
      %225 = vector.shape_cast %221 : vector<1x8xf32> to vector<1x1x8xf32>
      %226 = vector.broadcast %225 : vector<1x1x8xf32> to vector<1x16x8xf32>
      %227 = arith.mulf %224, %226 : vector<1x16x8xf32>
      %228 = arith.addf %220, %227 : vector<1x16x8xf32>
      %c0_132 = arith.constant 0 : index
      %c0_133 = arith.constant 0 : index
      %229 = vector.load %arg6[%c0_132, %c0_133] : memref<1x8xf32, #tpu.memory_space<vmem>>, vector<1x8xf32>
      %230 = vector.shape_cast %229 : vector<1x8xf32> to vector<1x1x8xf32>
      %231 = vector.broadcast %230 : vector<1x1x8xf32> to vector<1x16x8xf32>
      %232 = arith.addf %228, %231 : vector<1x16x8xf32>
      %233 = arith.index_cast %arg11 : i32 to index
      %c0_134 = arith.constant 0 : index
      %c0_135 = arith.constant 0 : index
      %234 = vector.load %arg10[%233, %c0_134, %c0_135] : memref<16x16x8xf32, #tpu.memory_space<vmem>>, vector<1x16x8xf32>
      tpu.vector_store %arg10[%233, %c0_134, %c0_135], %232 {strides = array<i32>} : memref<16x16x8xf32, #tpu.memory_space<vmem>>, vector<1x16x8xf32>,
    }
    %c16_i32_20 = arith.constant 16 : i32
    %c0_21 = arith.constant 0 : index
    %c0_22 = arith.constant 0 : index
    %c0_23 = arith.constant 0 : index
    %19 = vector.load %arg10[%c0_21, %c0_22, %c0_23] : memref<16x16x8xf32, #tpu.memory_space<vmem>>, vector<16x16x8xf32>
    %20 = vector.shape_cast %19 : vector<16x16x8xf32> to vector<256x8xf32>
    %21 = tpu.transpose %20, [1, 0] : vector<256x8xf32> -> vector<8x256xf32>
    %c0_24 = arith.constant 0 : index
    %c1 = arith.constant 1 : index
    %c0_25 = arith.constant 0 : index
    %c0_26 = arith.constant 0 : index
    %22 = vector.load %arg7[%c0_24, %c1, %c0_25, %c0_26] : memref<1x2x8x256xf32, #tpu.memory_space<vmem>>, vector<1x1x8x256xf32>
    %23 = vector.shape_cast %22 : vector<1x1x8x256xf32> to vector<8x256xf32>
    %24 = arith.addf %21, %23 : vector<8x256xf32>
    %c0_27 = arith.constant 0 : index
    %c1_28 = arith.constant 1 : index
    %c0_29 = arith.constant 0 : index
    %c0_30 = arith.constant 0 : index
    %25 = vector.load %arg8[%c0_27, %c1_28, %c0_29, %c0_30] : memref<1x2x8x256xf32, #tpu.memory_space<vmem>>, vector<1x1x8x256xf32>
    %26 = vector.shape_cast %25 : vector<1x1x8x256xf32> to vector<8x256xf32>
    %27 = vector.shape_cast %24 : vector<8x256xf32> to vector<1x1x8x256xf32>
    tpu.vector_store %arg8[%c0_27, %c1_28, %c0_29, %c0_30], %27 {strides = array<i32>} : memref<1x2x8x256xf32, #tpu.memory_space<vmem>>, vector<1x1x8x256xf32>,
    return
  }
  func.func @transform_0(%arg0: i32, %arg1: i32) -> (i32, i32, i32) {
    %c0_i32 = arith.constant 0 : i32
    %c0_i32_0 = arith.constant 0 : i32
    %c0_i32_1 = arith.constant 0 : i32
    return %arg0, %c0_i32, %c0_i32_0 : i32, i32, i32
  }
  func.func @transform_1(%arg0: i32, %arg1: i32) -> (i32, i32) {
    %c0_i32 = arith.constant 0 : i32
    %c0_i32_0 = arith.constant 0 : i32
    return %arg1, %c0_i32 : i32, i32
  }
  func.func @transform_2(%arg0: i32, %arg1: i32) -> (i32, i32) {
    %c0_i32 = arith.constant 0 : i32
    %c0_i32_0 = arith.constant 0 : i32
    return %arg1, %c0_i32 : i32, i32
  }
  func.func @transform_3(%arg0: i32, %arg1: i32) -> (i32, i32) {
    %c0_i32 = arith.constant 0 : i32
    %c0_i32_0 = arith.constant 0 : i32
    return %c0_i32, %arg1 : i32, i32
  }
  func.func @transform_4(%arg0: i32, %arg1: i32) -> (i32, i32) {
    %c0_i32 = arith.constant 0 : i32
    %c0_i32_0 = arith.constant 0 : i32
    return %c0_i32, %arg1 : i32, i32
  }
  func.func @transform_5(%arg0: i32, %arg1: i32) -> (i32, i32, i32, i32) {
    %c0_i32 = arith.constant 0 : i32
    %c0_i32_0 = arith.constant 0 : i32
    %c0_i32_1 = arith.constant 0 : i32
    return %arg0, %c0_i32, %arg1, %c0_i32_0 : i32, i32, i32, i32
  }
  func.func @transform_6(%arg0: i32, %arg1: i32) -> (i32, i32, i32, i32) {
    %c0_i32 = arith.constant 0 : i32
    %c0_i32_0 = arith.constant 0 : i32
    %c0_i32_1 = arith.constant 0 : i32
    return %arg0, %c0_i32, %arg1, %c0_i32_0 : i32, i32, i32, i32
  }
}

</mosaic_0001>

<bundles_post_ra>
// kernel: ghost_bottleneck_forward.2
= control target key start
LH: loop header
LB: loop body
LE: loop exit
PB: predicated region body
PF: predicated region fallthrough
CT: control target
= control target key end

     0   :  { %s1371_s18 = smov 0   ;;  %s1373_s19 = smov 0   ;;  %s1713_s0 = inlined_call_operand.vmem [shape: f32[2,16,256], index: 0, kind: input, shape index: {}]   ;;  %s1714_s1 = inlined_call_operand.vmem [shape: f32[4,16], index: 1, kind: input, shape index: {}]   ;;  %s1715_s2 = inlined_call_operand.vmem [shape: f32[4,1], index: 2, kind: input, shape index: {}]   ;;  %s1716_s3 = inlined_call_operand.vmem [shape: f32[25,4], index: 3, kind: input, shape index: {}]   ;;  %s1717_s4 = inlined_call_operand.vmem [shape: f32[1,4], index: 4, kind: input, shape index: {}]   ;;  %s1718_s5 = inlined_call_operand.vmem [shape: f32[2,2,4,256], index: 5, kind: output, shape index: {}]  }
   0x1   :  { %s1375_s20 = smov 0  }
   0x2 LB: > { %s27_s21 = sadd.s32 1, %s1329_s19  ;;  %p1170_p0 = scmp.ge.s32.totalorder %s1333_s20, 1  ;;  %s1333_s20 = sphi %s1375_s20, %s15_s20   ;;  %s1329_s19 = sphi %s1373_s19, %s1720_s19   ;;  %s1325_s18 = sphi %s1371_s18, %s1719_s18  }
   0x3   : > { %p29_p1 = scmp.ge.s32.totalorder %s27_s21, 2  ;;  %p236_p2 = scmp.lt.s32.totalorder %s1333_s20, 3 }
   0x5   : > { %s1722_s21 = smov (%p29_p1, %s27_s21), 0  ;;  %p237_p3 = pnand %p1170_p0, %p236_p2 }
   0x6   : > { %p283_p4 = scmp.lt.s32.totalorder (!%p237_p3), %s1325_s18, 1  ;;  %v1339_v0 = vmov (!%p237_p3), 0.0   ;;  %v1340_v1 = vmov (!%p237_p3), 0   ;;  %v317_v2 = vld [vmem:[%s1715_s2] sm:$0xf] (!%p237_p3)  ;;  %vm323_vm0 = vcmask (!%p237_p3), 130048  }
   0x7   : > { %240 = sbr.rel (%p237_p3) target bundleno = 687 (0x2af), region = 40  ;;  %391 = vmatprep.mubr.f32.mxu0 (!%p237_p3), %v1339_v0  ;;  %1290 = vset.pattern.permute.xlu0 (!%p237_p3), %v1340_v1  ;;  %v316_v9 = vld [vmem:[%s1714_s1] sm:$0xf] (!%p237_p3)  ;;  %vm417_vm1 = vcmask (!%p237_p3), 31744   ;;  %vm420_vm2 = vcmask (!%p237_p3), 27648   ;;  %s1561_s9 = smov (!%p237_p3), 0  }
   0x8   : > { %320 = vperm.xlu0 (!%p237_p3), %1290, %v317_v2   ;;  %449 = vst.msk [vmem:[#allocation2 + $0xf0] sm:$0xff] (!%p237_p3), %vm417_vm1, %v1339_v0  ;;  %450 = vst.msk [vmem:[#allocation2 + $0xf8] sm:$0xff] (!%p237_p3), %vm417_vm1, %v1339_v0 }
   0x9   : > { %418 = vst.msk [vmem:[#allocation2] sm:$0xff] (!%p237_p3), %vm417_vm1, %v1339_v0  ;;  %419 = vst.msk [vmem:[#allocation2 + $0x8] sm:$0xff] (!%p237_p3), %vm417_vm1, %v1339_v0 }
   0xa   : > { %422 = vst.msk [vmem:[#allocation2 + $0x18] sm:$0xff] (!%p237_p3), %vm417_vm1, %v1339_v0  ;;  %423 = vst.msk [vmem:[#allocation2 + $0x20] sm:$0xff] (!%p237_p3), %vm417_vm1, %v1339_v0 }
   0xb   : > { %425 = vst.msk [vmem:[#allocation2 + $0x30] sm:$0xff] (!%p237_p3), %vm417_vm1, %v1339_v0  ;;  %426 = vst.msk [vmem:[#allocation2 + $0x38] sm:$0xff] (!%p237_p3), %vm417_vm1, %v1339_v0 }
   0xc   : > { %428 = vst.msk [vmem:[#allocation2 + $0x48] sm:$0xff] (!%p237_p3), %vm417_vm1, %v1339_v0  ;;  %429 = vst.msk [vmem:[#allocation2 + $0x50] sm:$0xff] (!%p237_p3), %vm417_vm1, %v1339_v0 }
   0xd   : > { %431 = vst.msk [vmem:[#allocation2 + $0x60] sm:$0xff] (!%p237_p3), %vm417_vm1, %v1339_v0  ;;  %432 = vst.msk [vmem:[#allocation2 + $0x68] sm:$0xff] (!%p237_p3), %vm417_vm1, %v1339_v0 }
   0xe   : > { %s1724_s18 = smov (!%p283_p4, %s1325_s18), 1  ;;  %434 = vst.msk [vmem:[#allocation2 + $0x78] sm:$0xff] %vm417_vm1, %v1339_v0  ;;  %435 = vst.msk [vmem:[#allocation2 + $0x80] sm:$0xff] %vm417_vm1, %v1339_v0 }
   0xf   : > { %s1250_s24 = sshll.u32 %s1724_s18, 5  ;;  %437 = vst.msk [vmem:[#allocation2 + $0x90] sm:$0xff] %vm417_vm1, %v1339_v0  ;;  %438 = vst.msk [vmem:[#allocation2 + $0x98] sm:$0xff] %vm417_vm1, %v1339_v0  ;;  %s1251_s30 = sshll.u32 %s1724_s18, 4 }
  0x10   : > { %s287_s27 = scalar_lea.vmem %s1713_s0, %s1250_s24  ;;  %440 = vst.msk [vmem:[#allocation2 + $0xa8] sm:$0xff] %vm417_vm1, %v1339_v0  ;;  %441 = vst.msk [vmem:[#allocation2 + $0xb0] sm:$0xff] %vm417_vm1, %v1339_v0  ;;  %s1486_s8 = scalar_lea.vmem %s1718_s5, %s1251_s30 }
  0x11   : > { %v313_v3 = vld [vmem:[%s287_s27 + $0x8] sm:$0xff]  ;;  %v315_v4 = vld [vmem:[%s287_s27 + $0x18] sm:$0xff]  ;;  %v312_v5 = vld [vmem:[%s287_s27] sm:$0xff]  ;;  %443 = vst.msk [vmem:[#allocation2 + $0xc0] sm:$0xff] %vm417_vm1, %v1339_v0 }
  0x12   : > { %v1252_v6 = vpack.c.bf16 %v315_v4, %v313_v3  ;;  %v314_v7 = vld [vmem:[%s287_s27 + $0x10] sm:$0xff]  ;;  %444 = vst.msk [vmem:[#allocation2 + $0xc8] sm:$0xff] %vm417_vm1, %v1339_v0  ;;  %446 = vst.msk [vmem:[#allocation2 + $0xd8] sm:$0xff] %vm417_vm1, %v1339_v0 }
  0x13   : > { %v1254_v8 = vpack.c.bf16 %v314_v7, %v312_v5  ;;  %447 = vst.msk [vmem:[#allocation2 + $0xe0] sm:$0xff] %vm417_vm1, %v1339_v0  ;;  %452 = vst.msk [vmem:[#allocation2 + $0x108] sm:$0xff] %vm417_vm1, %v1339_v0 }
  0x14   : > { %1253 = vmatprep.subr.bf16.mxu0 %v1252_v6  ;;  %453 = vst.msk [vmem:[#allocation2 + $0x110] sm:$0xff] %vm417_vm1, %v1339_v0  ;;  %455 = vst.msk [vmem:[#allocation2 + $0x120] sm:$0xff] %vm417_vm1, %v1339_v0 }
  0x15   : > { %1255 = vmatpush1.bf16.msra.mxu0 %v1254_v8  ;;  %456 = vst.msk [vmem:[#allocation2 + $0x128] sm:$0xff] %vm417_vm1, %v1339_v0  ;;  %458 = vst.msk [vmem:[#allocation2 + $0x138] sm:$0xff] %vm417_vm1, %v1339_v0 }
  0x16   : > { %459 = vst.msk [vmem:[#allocation2 + $0x140] sm:$0xff] %vm417_vm1, %v1339_v0  ;;  %461 = vst.msk [vmem:[#allocation2 + $0x150] sm:$0xff] %vm417_vm1, %v1339_v0 }
  0x17   : > { %462 = vst.msk [vmem:[#allocation2 + $0x158] sm:$0xff] %vm417_vm1, %v1339_v0  ;;  %464 = vst.msk [vmem:[#allocation2 + $0x168] sm:$0xff] %vm417_vm1, %v1339_v0 }
  0x18   : > { %1175 = vmatmul.mubr.msk.f32.vlgmr.msra.gmra.mrb[0].mxu0 %vm323_vm0, %v316_v9  ;;  %465 = vst.msk [vmem:[#allocation2 + $0x170] sm:$0xff] %vm417_vm1, %v1339_v0  ;;  %467 = vst.msk [vmem:[#allocation2 + $0x180] sm:$0xff] %vm417_vm1, %v1339_v0 }
  0x19   : > { %468 = vst.msk [vmem:[#allocation2 + $0x188] sm:$0xff] %vm417_vm1, %v1339_v0  ;;  %470 = vst.msk [vmem:[#allocation2 + $0x198] sm:$0xff] %vm417_vm1, %v1339_v0 }
  0x1a   : > { %471 = vst.msk [vmem:[#allocation2 + $0x1a0] sm:$0xff] %vm417_vm1, %v1339_v0  ;;  %473 = vst.msk [vmem:[#allocation2 + $0x1b0] sm:$0xff] %vm417_vm1, %v1339_v0 }
  0x1b   : > { %474 = vst.msk [vmem:[#allocation2 + $0x1b8] sm:$0xff] %vm417_vm1, %v1339_v0  ;;  %476 = vst.msk [vmem:[#allocation2 + $0x1c8] sm:$0xff] %vm417_vm1, %v1339_v0 }
  0x1c   : > { %477 = vst.msk [vmem:[#allocation2 + $0x1d0] sm:$0xff] %vm417_vm1, %v1339_v0 }
  0x1d   : > { %421 = vst.msk [vmem:[#allocation2 + $0x10] sm:$0xf] %vm420_vm2, %v1339_v0  ;;  %424 = vst.msk [vmem:[#allocation2 + $0x28] sm:$0xf] %vm420_vm2, %v1339_v0 }
  0x1e   : > { %451 = vst.msk [vmem:[#allocation2 + $0x100] sm:$0xf] %vm420_vm2, %v1339_v0  ;;  %475 = vst.msk [vmem:[#allocation2 + $0x1c0] sm:$0xf] %vm420_vm2, %v1339_v0 }
  0x1f   : > { %478 = vst.msk [vmem:[#allocation2 + $0x1d8] sm:$0xf] %vm420_vm2, %v1339_v0  ;;  %427 = vst.msk [vmem:[#allocation2 + $0x40] sm:$0xf] %vm420_vm2, %v1339_v0 }
  0x20   : > { %430 = vst.msk [vmem:[#allocation2 + $0x58] sm:$0xf] %vm420_vm2, %v1339_v0  ;;  %433 = vst.msk [vmem:[#allocation2 + $0x70] sm:$0xf] %vm420_vm2, %v1339_v0 }
  0x21   : > { %436 = vst.msk [vmem:[#allocation2 + $0x88] sm:$0xf] %vm420_vm2, %v1339_v0  ;;  %439 = vst.msk [vmem:[#allocation2 + $0xa0] sm:$0xf] %vm420_vm2, %v1339_v0 }
  0x22   : > { %442 = vst.msk [vmem:[#allocation2 + $0xb8] sm:$0xf] %vm420_vm2, %v1339_v0  ;;  %445 = vst.msk [vmem:[#allocation2 + $0xd0] sm:$0xf] %vm420_vm2, %v1339_v0 }
  0x23   : > { %448 = vst.msk [vmem:[#allocation2 + $0xe8] sm:$0xf] %vm420_vm2, %v1339_v0  ;;  %454 = vst.msk [vmem:[#allocation2 + $0x118] sm:$0xf] %vm420_vm2, %v1339_v0 }
  0x24   : > { %457 = vst.msk [vmem:[#allocation2 + $0x130] sm:$0xf] %vm420_vm2, %v1339_v0  ;;  %460 = vst.msk [vmem:[#allocation2 + $0x148] sm:$0xf] %vm420_vm2, %v1339_v0 }
  0x25   : > { %463 = vst.msk [vmem:[#allocation2 + $0x160] sm:$0xf] %vm420_vm2, %v1339_v0  ;;  %466 = vst.msk [vmem:[#allocation2 + $0x178] sm:$0xf] %vm420_vm2, %v1339_v0 }
  0x26   : > { %469 = vst.msk [vmem:[#allocation2 + $0x190] sm:$0xf] %vm420_vm2, %v1339_v0  ;;  %472 = vst.msk [vmem:[#allocation2 + $0x1a8] sm:$0xf] %vm420_vm2, %v1339_v0 }
  0x87   : > { %v321_v10 = vpop.permute.xlu0 %320 }
  0xeb   : > { %v393_v11 = vpop.f32.mrb[0].mxu0 }
  0xec   : > { %v394_v12 = vadd.f32 %v393_v11, %v321_v10  ;;  %v395_v13 = vpop.f32.mrb[1].mxu0 }
  0xed   : > { %v396_v14 = vadd.f32 %v395_v13, %v321_v10 }
  0xee   : > { %v1176_v15 = vmul.f32 -1.442695, %v394_v12 }
  0xef   : > { %v1177_v16 = vmul.f32 -1.442695, %v396_v14 }
  0xf0   : > { %1291 = vpow2.f32 %v1176_v15 }
  0xf1   : > { %1293 = vpow2.f32 %v1177_v16 }
  0xfa   : > { %v1292_v17 = vpop.eup %1291 }
  0xfb   : > { %v1294_v18 = vpop.eup %1293  ;;  %v404_v19 = vadd.f32 1.0, %v1292_v17 }
  0xfc   : > { %v405_v20 = vadd.f32 1.0, %v1294_v18 }
  0xfd   : > { %1295 = vrcp.f32 %v404_v19 }
  0xfe   : > { %1297 = vrcp.f32 %v405_v20 }
 0x107   : > { %v1296_v21 = vpop.eup %1295 }
 0x108   : > { %v1298_v22 = vpop.eup %1297  ;;  %v410_v23 = vmul.f32 %v1296_v21, %v394_v12 }
 0x109   : > { %v411_v24 = vmul.f32 %v1298_v22, %v396_v14 }
 0x10a   : > { %479 = vxpose.xlu0.b32.start.end [1/1] (short) %v410_v23, 128 }
 0x10b   : > { %511 = vxpose.xlu1.b32.start.end [1/1] (short) %v411_v24, 128  ;;  %v414_v25 = vcombine.low %v410_v23, %v411_v24 }
 0x10d   : > { %416 = vst [vmem:[%s1486_s8] sm:$0xff] %v414_v25 }
 0x18a   : > { %v495_v26 = vpop.trf.xlu0 }
 0x18b   : > { %v527_v27 = vpop.trf.xlu1  ;;  %544 = vst.msk [vmem:[#allocation2 + $0x32] sm:$0xff] %vm417_vm1, %v495_v26 }
 0x18c   : > { %560 = vst.msk [vmem:[#allocation2 + $0xf2] sm:$0xff] %vm417_vm1, %v527_v27 }
 0x18e   : > { %v496_v28 = vpop.trf.xlu0 }
 0x18f   : > { %v528_v29 = vpop.trf.xlu1  ;;  %545 = vst.msk [vmem:[#allocation2 + $0x3a] sm:$0xff] %vm417_vm1, %v496_v28 }
 0x190   : > { %561 = vst.msk [vmem:[#allocation2 + $0xfa] sm:$0xff] %vm417_vm1, %v528_v29 }
 0x192   : > { %v497_v30 = vpop.trf.xlu0 }
 0x193   : > { %v529_v31 = vpop.trf.xlu1  ;;  %546 = vst.msk [vmem:[#allocation2 + $0x4a] sm:$0xff] %vm417_vm1, %v497_v30 }
 0x194   : > { %562 = vst.msk [vmem:[#allocation2 + $0x10a] sm:$0xff] %vm417_vm1, %v529_v31 }
 0x196   : > { %v498_v32 = vpop.trf.xlu0 }
 0x197   : > { %v530_v33 = vpop.trf.xlu1  ;;  %547 = vst.msk [vmem:[#allocation2 + $0x52] sm:$0xff] %vm417_vm1, %v498_v32 }
 0x198   : > { %563 = vst.msk [vmem:[#allocation2 + $0x112] sm:$0xff] %vm417_vm1, %v530_v33 }
 0x19a   : > { %v499_v34 = vpop.trf.xlu0 }
 0x19b   : > { %v531_v35 = vpop.trf.xlu1  ;;  %548 = vst.msk [vmem:[#allocation2 + $0x62] sm:$0xff] %vm417_vm1, %v499_v34 }
 0x19c   : > { %564 = vst.msk [vmem:[#allocation2 + $0x122] sm:$0xff] %vm417_vm1, %v531_v35 }
 0x19e   : > { %v500_v36 = vpop.trf.xlu0 }
 0x19f   : > { %v532_v37 = vpop.trf.xlu1  ;;  %549 = vst.msk [vmem:[#allocation2 + $0x6a] sm:$0xff] %vm417_vm1, %v500_v36 }
 0x1a0   : > { %565 = vst.msk [vmem:[#allocation2 + $0x12a] sm:$0xff] %vm417_vm1, %v532_v37 }
 0x1a2   : > { %v501_v38 = vpop.trf.xlu0 }
 0x1a3   : > { %v533_v39 = vpop.trf.xlu1  ;;  %550 = vst.msk [vmem:[#allocation2 + $0x7a] sm:$0xff] %vm417_vm1, %v501_v38 }
 0x1a4   : > { %566 = vst.msk [vmem:[#allocation2 + $0x13a] sm:$0xff] %vm417_vm1, %v533_v39 }
 0x1a6   : > { %v502_v40 = vpop.trf.xlu0 }
 0x1a7   : > { %v534_v41 = vpop.trf.xlu1  ;;  %551 = vst.msk [vmem:[#allocation2 + $0x82] sm:$0xff] %vm417_vm1, %v502_v40 }
 0x1a8   : > { %567 = vst.msk [vmem:[#allocation2 + $0x142] sm:$0xff] %vm417_vm1, %v534_v41 }
 0x1aa   : > { %v503_v42 = vpop.trf.xlu0 }
 0x1ab   : > { %v535_v43 = vpop.trf.xlu1  ;;  %552 = vst.msk [vmem:[#allocation2 + $0x92] sm:$0xff] %vm417_vm1, %v503_v42 }
 0x1ac   : > { %568 = vst.msk [vmem:[#allocation2 + $0x152] sm:$0xff] %vm417_vm1, %v535_v43 }
 0x1ae   : > { %v504_v44 = vpop.trf.xlu0 }
 0x1af   : > { %v536_v45 = vpop.trf.xlu1  ;;  %553 = vst.msk [vmem:[#allocation2 + $0x9a] sm:$0xff] %vm417_vm1, %v504_v44 }
 0x1b0   : > { %569 = vst.msk [vmem:[#allocation2 + $0x15a] sm:$0xff] %vm417_vm1, %v536_v45 }
 0x1b2   : > { %v505_v46 = vpop.trf.xlu0 }
 0x1b3   : > { %v537_v47 = vpop.trf.xlu1  ;;  %554 = vst.msk [vmem:[#allocation2 + $0xaa] sm:$0xff] %vm417_vm1, %v505_v46 }
 0x1b4   : > { %570 = vst.msk [vmem:[#allocation2 + $0x16a] sm:$0xff] %vm417_vm1, %v537_v47 }
 0x1b6   : > { %v506_v48 = vpop.trf.xlu0 }
 0x1b7   : > { %v538_v49 = vpop.trf.xlu1  ;;  %555 = vst.msk [vmem:[#allocation2 + $0xb2] sm:$0xff] %vm417_vm1, %v506_v48 }
 0x1b8   : > { %571 = vst.msk [vmem:[#allocation2 + $0x172] sm:$0xff] %vm417_vm1, %v538_v49 }
 0x1ba   : > { %v507_v50 = vpop.trf.xlu0 }
 0x1bb   : > { %v539_v51 = vpop.trf.xlu1  ;;  %556 = vst.msk [vmem:[#allocation2 + $0xc2] sm:$0xff] %vm417_vm1, %v507_v50 }
 0x1bc   : > { %572 = vst.msk [vmem:[#allocation2 + $0x182] sm:$0xff] %vm417_vm1, %v539_v51 }
 0x1be   : > { %v508_v52 = vpop.trf.xlu0 }
 0x1bf   : > { %v540_v53 = vpop.trf.xlu1  ;;  %557 = vst.msk [vmem:[#allocation2 + $0xca] sm:$0xff] %vm417_vm1, %v508_v52 }
 0x1c0   : > { %573 = vst.msk [vmem:[#allocation2 + $0x18a] sm:$0xff] %vm417_vm1, %v540_v53 }
 0x1c2   : > { %v509_v54 = vpop.trf.xlu0 }
 0x1c3   : > { %v541_v55 = vpop.trf.xlu1  ;;  %558 = vst.msk [vmem:[#allocation2 + $0xda] sm:$0xff] %vm417_vm1, %v509_v54 }
 0x1c4   : > { %574 = vst.msk [vmem:[#allocation2 + $0x19a] sm:$0xff] %vm417_vm1, %v541_v55 }
 0x1c6   : > { %v510_v56 = vpop.trf.xlu0 }
 0x1c7   : > { %v542_v57 = vpop.trf.xlu1  ;;  %559 = vst.msk [vmem:[#allocation2 + $0xe2] sm:$0xff] %vm417_vm1, %v510_v56 }
 0x1c8   : > { %575 = vst.msk [vmem:[#allocation2 + $0x1a2] sm:$0xff] %vm417_vm1, %v542_v57 }
 0x1c9 LB: >> { %s583_s10 = smul.u32 24, %s1337_s9  ;;  %v1178_v58 = vld [vmem:[%s1716_s3] ss:$0 sm:$0xff]  ;;  %v1179_v59 = vld [vmem:[%s1716_s3 + $0x1] ss:$0 sm:$0xff]  ;;  %s1337_s9 = sphi %s1561_s9, %s581_s9  }
 0x1ca   : >> { %v1180_v60 = vld [vmem:[%s1716_s3 + $0x2] ss:$0 sm:$0xff]  ;;  %v1181_v61 = vld [vmem:[%s1716_s3 + $0x3] ss:$0 sm:$0xff]  ;;  %v1182_v1 = vld [vmem:[%s1716_s3 + $0x4] ss:$0 sm:$0xff] }
 0x1cb   : >> { %s1579_s22 = scalar_lea.vmem [#allocation2], %s583_s10  ;;  %v1185_v19 = vld [vmem:[%s1716_s3 + $0x5] ss:$0 sm:$0xff]  ;;  %v1188_v26 = vld [vmem:[%s1716_s3 + $0x6] ss:$0 sm:$0xff] }
 0x1cc   : >> { %v1191_v33 = vld [vmem:[%s1716_s3 + $0x7] ss:$0 sm:$0xff]  ;;  %v1194_v40 = vld [vmem:[%s1716_s3 + $0x8] ss:$0 sm:$0xff]  ;;  %v1197_v47 = vld [vmem:[%s1716_s3 + $0x9] ss:$0 sm:$0xff] }
 0x1cd   : >> { %v1200_v54 = vld [vmem:[%s1716_s3 + $0xa] ss:$0 sm:$0xff] }
 0x1cf   : >> { %v585_v62 = vld [vmem:[%s1579_s22] sm:$0xff]  ;;  %v586_v63 = vld [vmem:[%s1579_s22 + $0x8] sm:$0xff]  ;;  %v1183_v20 = vld [vmem:[%s1579_s22 + $0x18] sm:$0xff] }
 0x1d0   : >> { %v596_v0 = vld [vmem:[%s1579_s22 + $0x1] sm:$0xff]  ;;  %v591_v2 = vmul.f32 %v1178_v58, %v585_v62  ;;  %v592_v3 = vmul.f32 %v1178_v58, %v586_v63  ;;  %v597_v4 = vld [vmem:[%s1579_s22 + $0x9] sm:$0xff]  ;;  %v1186_v27 = vld [vmem:[%s1579_s22 + $0x19] sm:$0xff]  ;;  %v649_v29 = vmul.f32 %v1185_v19, %v1183_v20 }
 0x1d1   : >> { %v602_v5 = vmul.f32 %v1179_v59, %v596_v0  ;;  %v607_v6 = vld [vmem:[%s1579_s22 + $0x2] sm:$0xff]  ;;  %v608_v7 = vld [vmem:[%s1579_s22 + $0xa] sm:$0xff]  ;;  %v603_v8 = vmul.f32 %v1179_v59, %v597_v4  ;;  %v1189_v34 = vld [vmem:[%s1579_s22 + $0x1a] sm:$0xff]  ;;  %v660_v36 = vmul.f32 %v1188_v26, %v1186_v27 }
 0x1d2   : >> { %v613_v9 = vmul.f32 %v1180_v60, %v607_v6  ;;  %v614_v10 = vmul.f32 %v1180_v60, %v608_v7  ;;  %v618_v11 = vld [vmem:[%s1579_s22 + $0x3] sm:$0xff]  ;;  %v619_v12 = vld [vmem:[%s1579_s22 + $0xb] sm:$0xff]  ;;  %v1192_v41 = vld [vmem:[%s1579_s22 + $0x1b] sm:$0xff]  ;;  %v671_v43 = vmul.f32 %v1191_v33, %v1189_v34 }
 0x1d3   : >> { %v629_v13 = vld [vmem:[%s1579_s22 + $0x4] sm:$0xff]  ;;  %v604_v14 = vadd.f32 %v602_v5, %v591_v2  ;;  %v624_v15 = vmul.f32 %v1181_v61, %v618_v11  ;;  %v630_v16 = vld [vmem:[%s1579_s22 + $0xc] sm:$0xff]  ;;  %v605_v17 = vadd.f32 %v603_v8, %v592_v3  ;;  %v625_v18 = vmul.f32 %v1181_v61, %v619_v12  ;;  %v1195_v48 = vld [vmem:[%s1579_s22 + $0x1c] sm:$0xff] }
 0x1d4   : >> { %v635_v22 = vmul.f32 %v1182_v1, %v629_v13  ;;  %v1184_v23 = vld [vmem:[%s1579_s22 + $0x20] sm:$0xff]  ;;  %v636_v25 = vmul.f32 %v1182_v1, %v630_v16  ;;  %v682_v50 = vmul.f32 %v1194_v40, %v1192_v41  ;;  %v1198_v55 = vld [vmem:[%s1579_s22 + $0x30] sm:$0xff]  ;;  %v693_v57 = vmul.f32 %v1197_v47, %v1195_v48  ;;  %v1199_v58 = vld [vmem:[%s1579_s22 + $0x38] sm:$0xff] }
 0x1d5   : >> { %v615_v21 = vadd.f32 %v613_v9, %v604_v14  ;;  %v616_v24 = vadd.f32 %v614_v10, %v605_v17  ;;  %v1187_v30 = vld [vmem:[%s1579_s22 + $0x21] sm:$0xff]  ;;  %v650_v32 = vmul.f32 %v1185_v19, %v1184_v23  ;;  %v1203_v61 = vld [vmem:[%s1716_s3 + $0xb] ss:$0 sm:$0xff]  ;;  %v1201_v62 = vld [vmem:[%s1579_s22 + $0x31] sm:$0xff]  ;;  %v707_v0 = vmul.f32 %v1200_v54, %v1198_v55 }
 0x1d6   : >> { %v1190_v37 = vld [vmem:[%s1579_s22 + $0x22] sm:$0xff]  ;;  %v661_v39 = vmul.f32 %v1188_v26, %v1187_v30  ;;  %v1202_v1 = vld [vmem:[%s1579_s22 + $0x39] sm:$0xff]  ;;  %v708_v3 = vmul.f32 %v1200_v54, %v1199_v58  ;;  %v1206_v4 = vld [vmem:[%s1716_s3 + $0xc] ss:$0 sm:$0xff]  ;;  %v718_v7 = vmul.f32 %v1203_v61, %v1201_v62 }
 0x1d7   : >> { %v626_v28 = vadd.f32 %v624_v15, %v615_v21  ;;  %v627_v31 = vadd.f32 %v625_v18, %v616_v24  ;;  %v1193_v44 = vld [vmem:[%s1579_s22 + $0x23] sm:$0xff]  ;;  %v672_v46 = vmul.f32 %v1191_v33, %v1190_v37  ;;  %v1204_v5 = vld [vmem:[%s1579_s22 + $0x32] sm:$0xff]  ;;  %v1205_v8 = vld [vmem:[%s1579_s22 + $0x3a] sm:$0xff]  ;;  %v719_v10 = vmul.f32 %v1203_v61, %v1202_v1 }
 0x1d8   : >> { %v1196_v51 = vld [vmem:[%s1579_s22 + $0x24] sm:$0xff]  ;;  %v683_v53 = vmul.f32 %v1194_v40, %v1193_v44  ;;  %v1209_v11 = vld [vmem:[%s1716_s3 + $0xd] ss:$0 sm:$0xff]  ;;  %v1207_v12 = vld [vmem:[%s1579_s22 + $0x33] sm:$0xff]  ;;  %v729_v14 = vmul.f32 %v1206_v4, %v1204_v5  ;;  %v730_v17 = vmul.f32 %v1206_v4, %v1205_v8 }
 0x1d9   : >> { %v637_v35 = vadd.f32 %v635_v22, %v626_v28  ;;  %v638_v38 = vadd.f32 %v636_v25, %v627_v31  ;;  %v694_v60 = vmul.f32 %v1197_v47, %v1196_v51  ;;  %v1208_v15 = vld [vmem:[%s1579_s22 + $0x3b] sm:$0xff]  ;;  %v1212_v18 = vld [vmem:[%s1716_s3 + $0xe] ss:$0 sm:$0xff]  ;;  %v740_v21 = vmul.f32 %v1209_v11, %v1207_v12  ;;  %v1215_v25 = vld [vmem:[%s1716_s3 + $0xf] ss:$0 sm:$0xff] }
 0x1da   : >> { %v1210_v19 = vld [vmem:[%s1579_s22 + $0x34] sm:$0xff]  ;;  %v1211_v22 = vld [vmem:[%s1579_s22 + $0x3c] sm:$0xff]  ;;  %v741_v24 = vmul.f32 %v1209_v11, %v1208_v15  ;;  %v1213_v26 = vld [vmem:[%s1579_s22 + $0x48] sm:$0xff] }
 0x1db   : >> { %v651_v42 = vadd.f32 %v649_v29, %v637_v35  ;;  %v652_v45 = vadd.f32 %v650_v32, %v638_v38  ;;  %v751_v28 = vmul.f32 %v1212_v18, %v1210_v19  ;;  %v1214_v29 = vld [vmem:[%s1579_s22 + $0x50] sm:$0xff]  ;;  %v752_v31 = vmul.f32 %v1212_v18, %v1211_v22  ;;  %v1228_v61 = vld [vmem:[%s1579_s22 + $0x60] sm:$0xff] }
 0x1dc   : >> { %v1218_v32 = vld [vmem:[%s1716_s3 + $0x10] ss:$0 sm:$0xff]  ;;  %v765_v35 = vmul.f32 %v1215_v25, %v1213_v26  ;;  %v766_v38 = vmul.f32 %v1215_v25, %v1214_v29  ;;  %v1231_v4 = vld [vmem:[%s1579_s22 + $0x61] sm:$0xff] }
 0x1dd   : >> { %v662_v49 = vadd.f32 %v660_v36, %v651_v42  ;;  %v663_v52 = vadd.f32 %v661_v39, %v652_v45  ;;  %v1216_v33 = vld [vmem:[%s1579_s22 + $0x49] sm:$0xff]  ;;  %v1217_v36 = vld [vmem:[%s1579_s22 + $0x51] sm:$0xff] }
 0x1de   : >> { %v1221_v39 = vld [vmem:[%s1716_s3 + $0x11] ss:$0 sm:$0xff]  ;;  %v776_v42 = vmul.f32 %v1218_v32, %v1216_v33  ;;  %v777_v45 = vmul.f32 %v1218_v32, %v1217_v36  ;;  %v1234_v11 = vld [vmem:[%s1579_s22 + $0x62] sm:$0xff] }
 0x1df   : >> { %v673_v56 = vadd.f32 %v671_v43, %v662_v49  ;;  %v674_v59 = vadd.f32 %v672_v46, %v663_v52  ;;  %v1219_v40 = vld [vmem:[%s1579_s22 + $0x4a] sm:$0xff]  ;;  %v1220_v43 = vld [vmem:[%s1579_s22 + $0x52] sm:$0xff] }
 0x1e0   : >> { %v1224_v46 = vld [vmem:[%s1716_s3 + $0x12] ss:$0 sm:$0xff]  ;;  %v787_v49 = vmul.f32 %v1221_v39, %v1219_v40  ;;  %v788_v52 = vmul.f32 %v1221_v39, %v1220_v43  ;;  %v1237_v18 = vld [vmem:[%s1579_s22 + $0x63] sm:$0xff] }
 0x1e1   : >> { %v684_v63 = vadd.f32 %v682_v50, %v673_v56  ;;  %v685_v2 = vadd.f32 %v683_v53, %v674_v59  ;;  %v1222_v47 = vld [vmem:[%s1579_s22 + $0x4b] sm:$0xff]  ;;  %v1223_v50 = vld [vmem:[%s1579_s22 + $0x53] sm:$0xff] }
 0x1e2   : >> { %v1227_v53 = vld [vmem:[%s1716_s3 + $0x13] ss:$0 sm:$0xff]  ;;  %v798_v56 = vmul.f32 %v1224_v46, %v1222_v47  ;;  %v799_v59 = vmul.f32 %v1224_v46, %v1223_v50  ;;  %v1240_v25 = vld [vmem:[%s1579_s22 + $0x64] sm:$0xff] }
 0x1e3   : >> { %v695_v6 = vadd.f32 %v693_v57, %v684_v63  ;;  %v696_v9 = vadd.f32 %v694_v60, %v685_v2  ;;  %v1225_v54 = vld [vmem:[%s1579_s22 + $0x4c] sm:$0xff]  ;;  %v1226_v57 = vld [vmem:[%s1579_s22 + $0x54] sm:$0xff] }
 0x1e4   : >> { %v1230_v60 = vld [vmem:[%s1716_s3 + $0x14] ss:$0 sm:$0xff]  ;;  %v809_v63 = vmul.f32 %v1227_v53, %v1225_v54  ;;  %v810_v2 = vmul.f32 %v1227_v53, %v1226_v57 }
 0x1e5   : >> { %v709_v13 = vadd.f32 %v707_v0, %v695_v6  ;;  %v710_v16 = vadd.f32 %v708_v3, %v696_v9  ;;  %v1229_v0 = vld [vmem:[%s1579_s22 + $0x68] sm:$0xff]  ;;  %v1233_v3 = vld [vmem:[%s1716_s3 + $0x15] ss:$0 sm:$0xff]  ;;  %v823_v6 = vmul.f32 %v1230_v60, %v1228_v61 }
 0x1e6   : >> { %v824_v9 = vmul.f32 %v1230_v60, %v1229_v0 }
 0x1e7   : >> { %v720_v20 = vadd.f32 %v718_v7, %v709_v13  ;;  %v721_v23 = vadd.f32 %v719_v10, %v710_v16  ;;  %v1232_v7 = vld [vmem:[%s1579_s22 + $0x69] sm:$0xff]  ;;  %v1236_v10 = vld [vmem:[%s1716_s3 + $0x16] ss:$0 sm:$0xff]  ;;  %v834_v13 = vmul.f32 %v1233_v3, %v1231_v4 }
 0x1e8   : >> { %v835_v16 = vmul.f32 %v1233_v3, %v1232_v7 }
 0x1e9   : >> { %v731_v27 = vadd.f32 %v729_v14, %v720_v20  ;;  %v732_v30 = vadd.f32 %v730_v17, %v721_v23  ;;  %v1235_v14 = vld [vmem:[%s1579_s22 + $0x6a] sm:$0xff]  ;;  %v1239_v17 = vld [vmem:[%s1716_s3 + $0x17] ss:$0 sm:$0xff]  ;;  %v845_v20 = vmul.f32 %v1236_v10, %v1234_v11 }
 0x1ea   : >> { %v846_v23 = vmul.f32 %v1236_v10, %v1235_v14 }
 0x1eb   : >> { %v742_v34 = vadd.f32 %v740_v21, %v731_v27  ;;  %v743_v37 = vadd.f32 %v741_v24, %v732_v30  ;;  %v1238_v21 = vld [vmem:[%s1579_s22 + $0x6b] sm:$0xff]  ;;  %v1242_v24 = vld [vmem:[%s1716_s3 + $0x18] ss:$0 sm:$0xff]  ;;  %v856_v27 = vmul.f32 %v1239_v17, %v1237_v18 }
 0x1ec   : >> { %v857_v30 = vmul.f32 %v1239_v17, %v1238_v21  ;;  %v867_v32 = vmul.f32 %v1242_v24, %v1240_v25 }
 0x1ed   : >> { %v753_v41 = vadd.f32 %v751_v28, %v742_v34  ;;  %v754_v44 = vadd.f32 %v752_v31, %v743_v37  ;;  %v1241_v28 = vld [vmem:[%s1579_s22 + $0x6c] sm:$0xff]  ;;  %v1243_v37 = vld [vmem:[%s1717_s4] ss:$0 sm:$0xff]  ;;  %s1246_s22 = sshll.u32 %s1337_s9, 4  ;;  %s581_s9 = sadd.s32 1, %s1337_s9  }
 0x1ee   : >> { %v868_v34 = vmul.f32 %v1242_v24, %v1241_v28  ;;  %s895_s29 = scalar_lea.vmem [#allocation3], %s1246_s22  ;;  %p578_p5 = scmp.ge.s32.totalorder %s581_s9, 16  }
 0x1ef   : >> { %v767_v48 = vadd.f32 %v765_v35, %v753_v41  ;;  %v768_v51 = vadd.f32 %v766_v38, %v754_v44 }
 0x1f1   : >> { %v778_v55 = vadd.f32 %v776_v42, %v767_v48  ;;  %v779_v58 = vadd.f32 %v777_v45, %v768_v51 }
 0x1f3   : >> { %v789_v62 = vadd.f32 %v787_v49, %v778_v55  ;;  %v790_v1 = vadd.f32 %v788_v52, %v779_v58 }
 0x1f5   : >> { %v800_v5 = vadd.f32 %v798_v56, %v789_v62  ;;  %v801_v8 = vadd.f32 %v799_v59, %v790_v1 }
 0x1f7   : >> { %v811_v12 = vadd.f32 %v809_v63, %v800_v5  ;;  %v812_v15 = vadd.f32 %v810_v2, %v801_v8 }
 0x1f9   : >> { %v825_v19 = vadd.f32 %v823_v6, %v811_v12  ;;  %v826_v22 = vadd.f32 %v824_v9, %v812_v15 }
 0x1fb   : >> { %v836_v26 = vadd.f32 %v834_v13, %v825_v19  ;;  %v837_v29 = vadd.f32 %v835_v16, %v826_v22 }
 0x1fd   : >> { %v847_v31 = vadd.f32 %v845_v20, %v836_v26  ;;  %v848_v33 = vadd.f32 %v846_v23, %v837_v29 }
 0x1ff   : >> { %v858_v35 = vadd.f32 %v856_v27, %v847_v31  ;;  %v859_v36 = vadd.f32 %v857_v30, %v848_v33 }
 0x201   : >> { %v869_v38 = vadd.f32 %v867_v32, %v858_v35  ;;  %v870_v39 = vadd.f32 %v868_v34, %v859_v36 }
 0x203   : >> { %v878_v40 = vadd.f32 %v1243_v37, %v869_v38  ;;  %v879_v41 = vadd.f32 %v1243_v37, %v870_v39 }
 0x205   : >> { %v1244_v42 = vmul.f32 -1.442695, %v878_v40  ;;  %v1245_v43 = vmul.f32 -1.442695, %v879_v41 }
 0x207   : >> { %1299 = vpow2.f32 %v1244_v42 }
 0x208   : >> { %1301 = vpow2.f32 %v1245_v43 }
 0x211   : >> { %v1300_v44 = vpop.eup %1299 }
 0x212   : >> { %v1302_v45 = vpop.eup %1301  ;;  %v886_v46 = vadd.f32 1.0, %v1300_v44 }
 0x213   : >> { %v887_v47 = vadd.f32 1.0, %v1302_v45 }
 0x214   : >> { %1303 = vrcp.f32 %v886_v46 }
 0x215   : >> { %1305 = vrcp.f32 %v887_v47 }
 0x21c   : > { %580 = sbr.rel (!%p578_p5) target bundleno = 457 (0x1c9), region = 97 }
 0x21e   : >> { %v1304_v48 = vpop.eup %1303 }
 0x21f   : >> { %v1306_v49 = vpop.eup %1305  ;;  %v892_v50 = vmul.f32 %v1304_v48, %v878_v40 }
 0x220   : >> { %v893_v51 = vmul.f32 %v1306_v49, %v879_v41 }
 0x221   : >> { %896 = vst.msk [vmem:[%s895_s29] sm:$0xff] %vm417_vm1, %v892_v50 }
 0x222   : >> { %897 = vst.msk [vmem:[%s895_s29 + $0x8] sm:$0xff] %vm417_vm1, %v893_v51 }
 0x229   : > { %v914_v52 = vld [vmem:[#allocation3 + $0x80] sm:$0xff]  ;;  %v915_v54 = vld [vmem:[#allocation3 + $0x88] sm:$0xff]  ;;  %v916_v56 = vld [vmem:[#allocation3 + $0x90] sm:$0xff] }
 0x22a   : > { %v898_v53 = vld [vmem:[#allocation3] sm:$0xff]  ;;  %962 = vxpose.xlu1.b32.start [1/16] (narrow) %v914_v52, 8  ;;  %v899_v55 = vld [vmem:[#allocation3 + $0x8] sm:$0xff]  ;;  %v900_v57 = vld [vmem:[#allocation3 + $0x10] sm:$0xff] }
 0x22b   : > { %930 = vxpose.xlu0.b32.start [1/16] (narrow) %v898_v53, 8  ;;  %v917_v58 = vld [vmem:[#allocation3 + $0x98] sm:$0xff]  ;;  %v918_v60 = vld [vmem:[#allocation3 + $0xa0] sm:$0xff]  ;;  %v919_v62 = vld [vmem:[#allocation3 + $0xa8] sm:$0xff] }
 0x22c   : > { %v901_v59 = vld [vmem:[#allocation3 + $0x18] sm:$0xff]  ;;  %v902_v61 = vld [vmem:[#allocation3 + $0x20] sm:$0xff]  ;;  %v903_v63 = vld [vmem:[#allocation3 + $0x28] sm:$0xff] }
 0x22d   : > { %v920_v0 = vld [vmem:[#allocation3 + $0xb0] sm:$0xff]  ;;  %v921_v2 = vld [vmem:[#allocation3 + $0xb8] sm:$0xff]  ;;  %v922_v4 = vld [vmem:[#allocation3 + $0xc0] sm:$0xff] }
 0x22e   : > { %963 = vxpose.xlu1.b32.cont [2/16] (narrow) %v915_v54, 8  ;;  %v904_v1 = vld [vmem:[#allocation3 + $0x30] sm:$0xff]  ;;  %v905_v3 = vld [vmem:[#allocation3 + $0x38] sm:$0xff]  ;;  %v906_v5 = vld [vmem:[#allocation3 + $0x40] sm:$0xff] }
 0x22f   : > { %931 = vxpose.xlu0.b32.cont [2/16] (narrow) %v899_v55, 8  ;;  %v923_v6 = vld [vmem:[#allocation3 + $0xc8] sm:$0xff]  ;;  %v924_v8 = vld [vmem:[#allocation3 + $0xd0] sm:$0xff]  ;;  %v925_v10 = vld [vmem:[#allocation3 + $0xd8] sm:$0xff] }
 0x230   : > { %v907_v7 = vld [vmem:[#allocation3 + $0x48] sm:$0xff]  ;;  %v908_v9 = vld [vmem:[#allocation3 + $0x50] sm:$0xff]  ;;  %v909_v11 = vld [vmem:[#allocation3 + $0x58] sm:$0xff] }
 0x231   : > { %v926_v12 = vld [vmem:[#allocation3 + $0xe0] sm:$0xff]  ;;  %v927_v14 = vld [vmem:[#allocation3 + $0xe8] sm:$0xff]  ;;  %v928_v16 = vld [vmem:[#allocation3 + $0xf0] sm:$0xff] }
 0x232   : > { %964 = vxpose.xlu1.b32.cont [3/16] (narrow) %v916_v56, 8  ;;  %v910_v13 = vld [vmem:[#allocation3 + $0x60] sm:$0xff]  ;;  %v911_v15 = vld [vmem:[#allocation3 + $0x68] sm:$0xff]  ;;  %v912_v17 = vld [vmem:[#allocation3 + $0x70] sm:$0xff] }
 0x233   : > { %932 = vxpose.xlu0.b32.cont [3/16] (narrow) %v900_v57, 8  ;;  %v929_v18 = vld [vmem:[#allocation3 + $0xf8] sm:$0xff] }
 0x234   : > { %v913_v19 = vld [vmem:[#allocation3 + $0x78] sm:$0xff] }
 0x236   : > { %965 = vxpose.xlu1.b32.cont [4/16] (narrow) %v917_v58, 8 }
 0x237   : > { %933 = vxpose.xlu0.b32.cont [4/16] (narrow) %v901_v59, 8 }
 0x23a   : > { %966 = vxpose.xlu1.b32.cont [5/16] (narrow) %v918_v60, 8 }
 0x23b   : > { %934 = vxpose.xlu0.b32.cont [5/16] (narrow) %v902_v61, 8 }
 0x23e   : > { %967 = vxpose.xlu1.b32.cont [6/16] (narrow) %v919_v62, 8 }
 0x23f   : > { %935 = vxpose.xlu0.b32.cont [6/16] (narrow) %v903_v63, 8 }
 0x242   : > { %968 = vxpose.xlu1.b32.cont [7/16] (narrow) %v920_v0, 8 }
 0x243   : > { %936 = vxpose.xlu0.b32.cont [7/16] (narrow) %v904_v1, 8 }
 0x246   : > { %969 = vxpose.xlu1.b32.cont [8/16] (narrow) %v921_v2, 8 }
 0x247   : > { %937 = vxpose.xlu0.b32.cont [8/16] (narrow) %v905_v3, 8 }
 0x24a   : > { %970 = vxpose.xlu1.b32.cont [9/16] (narrow) %v922_v4, 8 }
 0x24b   : > { %938 = vxpose.xlu0.b32.cont [9/16] (narrow) %v906_v5, 8 }
 0x24e   : > { %971 = vxpose.xlu1.b32.cont [10/16] (narrow) %v923_v6, 8 }
 0x24f   : > { %939 = vxpose.xlu0.b32.cont [10/16] (narrow) %v907_v7, 8 }
 0x252   : > { %972 = vxpose.xlu1.b32.cont [11/16] (narrow) %v924_v8, 8 }
 0x253   : > { %940 = vxpose.xlu0.b32.cont [11/16] (narrow) %v908_v9, 8 }
 0x256   : > { %973 = vxpose.xlu1.b32.cont [12/16] (narrow) %v925_v10, 8 }
 0x257   : > { %941 = vxpose.xlu0.b32.cont [12/16] (narrow) %v909_v11, 8 }
 0x25a   : > { %974 = vxpose.xlu1.b32.cont [13/16] (narrow) %v926_v12, 8 }
 0x25b   : > { %942 = vxpose.xlu0.b32.cont [13/16] (narrow) %v910_v13, 8 }
 0x25e   : > { %975 = vxpose.xlu1.b32.cont [14/16] (narrow) %v927_v14, 8 }
 0x25f   : > { %943 = vxpose.xlu0.b32.cont [14/16] (narrow) %v911_v15, 8 }
 0x262   : > { %976 = vxpose.xlu1.b32.cont [15/16] (narrow) %v928_v16, 8 }
 0x263   : > { %944 = vxpose.xlu0.b32.cont [15/16] (narrow) %v912_v17, 8 }
 0x266   : > { %977 = vxpose.xlu1.b32.end [16/16] (narrow) %v929_v18, 8 }
 0x267   : > { %945 = vxpose.xlu0.b32.end [16/16] (narrow) %v913_v19, 8 }
 0x2aa   : > { %v978_v20 = vpop.trf.xlu1 }
 0x2ab   : > { %v946_v21 = vpop.trf.xlu0 }
 0x2ac   : > { %v996_v22 = vcombine.low %v946_v21, %v978_v20 }
 0x2ae   : > { %1247 = vst [vmem:[%s1486_s8 + $0x8] sm:$0xff] %v996_v22 }
 0x2af PF: > { %s15_s20 = sadd.s32 1, %s1333_s20   ;;  %s1719_s18 = smov %s1329_s19 }
 0x2b0   : > { %p12_p6 = scmp.ge.s32.totalorder %s15_s20, 4   ;;  %s1720_s19 = smov %s1722_s21 }
 0x2b2   :  { %14 = sbr.rel (!%p12_p6) target bundleno = 2 (0x2), region = 108 }

// kernel: ghost_bottleneck_forward.3
= control target key start
LH: loop header
LB: loop body
LE: loop exit
PB: predicated region body
PF: predicated region fallthrough
CT: control target
= control target key end

     0   :  { %s1412_s21 = smov 0   ;;  %s1414_s22 = smov 0   ;;  %s1768_s0 = inlined_call_operand.vmem [shape: f32[2,8,256], index: 0, kind: input, shape index: {}]   ;;  %s1769_s1 = inlined_call_operand.vmem [shape: f32[8,8], index: 1, kind: input, shape index: {}]   ;;  %s1770_s2 = inlined_call_operand.vmem [shape: f32[8,1], index: 2, kind: input, shape index: {}]   ;;  %s1771_s3 = inlined_call_operand.vmem [shape: f32[25,8], index: 3, kind: input, shape index: {}]   ;;  %s1772_s4 = inlined_call_operand.vmem [shape: f32[1,8], index: 4, kind: input, shape index: {}]   ;;  %s1773_s5 = inlined_call_operand.vmem [shape: f32[2,2,8,256], index: 5, kind: input, shape index: {}]   ;;  %s1774_s6 = inlined_call_operand.vmem [shape: f32[2,2,8,256], index: 6, kind: output, shape index: {}]  }
   0x1   :  { %s1416_s23 = smov 0  }
   0x2 LB: > { %s28_s24 = sadd.s32 1, %s1365_s22  ;;  %p1224_p0 = scmp.ge.s32.totalorder %s1369_s23, 1  ;;  %s1369_s23 = sphi %s1416_s23, %s16_s23   ;;  %s1365_s22 = sphi %s1414_s22, %s1776_s22   ;;  %s1361_s21 = sphi %s1412_s21, %s1775_s21  }
   0x3   : > { %p30_p1 = scmp.ge.s32.totalorder %s28_s24, 2  ;;  %p277_p2 = scmp.lt.s32.totalorder %s1369_s23, 3 }
   0x5   : > { %s1778_s24 = smov (%p30_p1, %s28_s24), 0  ;;  %p278_p3 = pnand %p1224_p0, %p277_p2 }
   0x6   : > { %p335_p4 = scmp.lt.s32.totalorder (!%p278_p3), %s1361_s21, 1  ;;  %vm382_vm0 = vcmask (!%p278_p3), 64512   ;;  %v376_v0 = vld [vmem:[%s1770_s2] sm:$0xff] (!%p278_p3)  ;;  %v1375_v1 = vmov (!%p278_p3), 0.0   ;;  %v1376_v2 = vmov (!%p278_p3), 0   ;;  %vm465_vm1 = vcmask (!%p278_p3), 60416  }
   0x7   : > { %281 = sbr.rel (%p278_p3) target bundleno = 626 (0x272), region = 44  ;;  %450 = vmatprep.mubr.f32.mxu0 (!%p278_p3), %v1375_v1  ;;  %463 = vst.msk [vmem:[#allocation2] sm:$0xff] (!%p278_p3), %vm382_vm0, %v1375_v1  ;;  %464 = vst.msk [vmem:[#allocation2 + $0x8] sm:$0xff] (!%p278_p3), %vm382_vm0, %v1375_v1  ;;  %1342 = vset.pattern.permute.xlu0 (!%p278_p3), %v1376_v2  ;;  %v375_v5 = vld [vmem:[%s1769_s1] sm:$0xff] (!%p278_p3)  ;;  %s1613_s16 = smov (!%p278_p3), 0  }
   0x8   : > { %467 = vst.msk [vmem:[#allocation2 + $0x18] sm:$0xff] (!%p278_p3), %vm382_vm0, %v1375_v1  ;;  %468 = vst.msk [vmem:[#allocation2 + $0x20] sm:$0xff] (!%p278_p3), %vm382_vm0, %v1375_v1  ;;  %379 = vperm.xlu0 (!%p278_p3), %1342, %v376_v0  }
   0x9   : > { %470 = vst.msk [vmem:[#allocation2 + $0x30] sm:$0xff] (!%p278_p3), %vm382_vm0, %v1375_v1  ;;  %471 = vst.msk [vmem:[#allocation2 + $0x38] sm:$0xff] (!%p278_p3), %vm382_vm0, %v1375_v1 }
   0xa   : > { %473 = vst.msk [vmem:[#allocation2 + $0x48] sm:$0xff] (!%p278_p3), %vm382_vm0, %v1375_v1  ;;  %474 = vst.msk [vmem:[#allocation2 + $0x50] sm:$0xff] (!%p278_p3), %vm382_vm0, %v1375_v1 }
   0xb   : > { %476 = vst.msk [vmem:[#allocation2 + $0x60] sm:$0xff] (!%p278_p3), %vm382_vm0, %v1375_v1  ;;  %477 = vst.msk [vmem:[#allocation2 + $0x68] sm:$0xff] (!%p278_p3), %vm382_vm0, %v1375_v1 }
   0xc   : > { %479 = vst.msk [vmem:[#allocation2 + $0x78] sm:$0xff] (!%p278_p3), %vm382_vm0, %v1375_v1  ;;  %480 = vst.msk [vmem:[#allocation2 + $0x80] sm:$0xff] (!%p278_p3), %vm382_vm0, %v1375_v1 }
   0xd   : > { %482 = vst.msk [vmem:[#allocation2 + $0x90] sm:$0xff] (!%p278_p3), %vm382_vm0, %v1375_v1  ;;  %483 = vst.msk [vmem:[#allocation2 + $0x98] sm:$0xff] (!%p278_p3), %vm382_vm0, %v1375_v1 }
   0xe   : > { %485 = vst.msk [vmem:[#allocation2 + $0xa8] sm:$0xff] %vm382_vm0, %v1375_v1  ;;  %486 = vst.msk [vmem:[#allocation2 + $0xb0] sm:$0xff] %vm382_vm0, %v1375_v1  ;;  %s1780_s21 = smov (!%p335_p4, %s1361_s21), 1 }
   0xf   : > { %488 = vst.msk [vmem:[#allocation2 + $0xc0] sm:$0xff] %vm382_vm0, %v1375_v1  ;;  %489 = vst.msk [vmem:[#allocation2 + $0xc8] sm:$0xff] %vm382_vm0, %v1375_v1  ;;  %s1305_s27 = sshll.u32 %s1780_s21, 4  ;;  %s1306_s9 = sshll.u32 %s1780_s21, 5 }
  0x10   : > { %491 = vst.msk [vmem:[#allocation2 + $0xd8] sm:$0xff] %vm382_vm0, %v1375_v1  ;;  %492 = vst.msk [vmem:[#allocation2 + $0xe0] sm:$0xff] %vm382_vm0, %v1375_v1  ;;  %s339_s30 = scalar_lea.vmem %s1768_s0, %s1305_s27  ;;  %s1530_s12 = scalar_lea.vmem %s1773_s5, %s1306_s9 }
  0x11   : > { %494 = vst.msk [vmem:[#allocation2 + $0xf0] sm:$0xff] %vm382_vm0, %v1375_v1  ;;  %495 = vst.msk [vmem:[#allocation2 + $0xf8] sm:$0xff] %vm382_vm0, %v1375_v1  ;;  %v374_v3 = vld [vmem:[%s339_s30 + $0x8] sm:$0xff]  ;;  %v373_v4 = vld [vmem:[%s339_s30] sm:$0xff]  ;;  %s1537_s15 = scalar_lea.vmem %s1774_s6, %s1306_s9 }
  0x12   : > { %497 = vst.msk [vmem:[#allocation2 + $0x108] sm:$0xff] %vm382_vm0, %v1375_v1  ;;  %498 = vst.msk [vmem:[#allocation2 + $0x110] sm:$0xff] %vm382_vm0, %v1375_v1  ;;  %386 = vmatprep.subr.mxu0 %v374_v3  ;;  %v457_v8 = vld [vmem:[%s1530_s12] sm:$0xff]  ;;  %v458_v11 = vld [vmem:[%s1530_s12 + $0x8] sm:$0xff] }
  0x13   : > { %500 = vst.msk [vmem:[#allocation2 + $0x120] sm:$0xff] %vm382_vm0, %v1375_v1  ;;  %501 = vst.msk [vmem:[#allocation2 + $0x128] sm:$0xff] %vm382_vm0, %v1375_v1  ;;  %387 = vmatpush1.msra.mxu0 %v373_v4 }
  0x14   : > { %503 = vst.msk [vmem:[#allocation2 + $0x138] sm:$0xff] %vm382_vm0, %v1375_v1  ;;  %504 = vst.msk [vmem:[#allocation2 + $0x140] sm:$0xff] %vm382_vm0, %v1375_v1  ;;  %1231 = vmatmul.mubr.msk.f32.vlgmr.msra.gmra.mrb[0].mxu0 %vm382_vm0, %v375_v5 }
  0x15   : > { %506 = vst.msk [vmem:[#allocation2 + $0x150] sm:$0xff] %vm382_vm0, %v1375_v1  ;;  %507 = vst.msk [vmem:[#allocation2 + $0x158] sm:$0xff] %vm382_vm0, %v1375_v1 }
  0x16   : > { %509 = vst.msk [vmem:[#allocation2 + $0x168] sm:$0xff] %vm382_vm0, %v1375_v1  ;;  %510 = vst.msk [vmem:[#allocation2 + $0x170] sm:$0xff] %vm382_vm0, %v1375_v1 }
  0x17   : > { %512 = vst.msk [vmem:[#allocation2 + $0x180] sm:$0xff] %vm382_vm0, %v1375_v1  ;;  %513 = vst.msk [vmem:[#allocation2 + $0x188] sm:$0xff] %vm382_vm0, %v1375_v1 }
  0x18   : > { %515 = vst.msk [vmem:[#allocation2 + $0x198] sm:$0xff] %vm382_vm0, %v1375_v1  ;;  %516 = vst.msk [vmem:[#allocation2 + $0x1a0] sm:$0xff] %vm382_vm0, %v1375_v1 }
  0x19   : > { %518 = vst.msk [vmem:[#allocation2 + $0x1b0] sm:$0xff] %vm382_vm0, %v1375_v1  ;;  %519 = vst.msk [vmem:[#allocation2 + $0x1b8] sm:$0xff] %vm382_vm0, %v1375_v1 }
  0x1a   : > { %521 = vst.msk [vmem:[#allocation2 + $0x1c8] sm:$0xff] %vm382_vm0, %v1375_v1  ;;  %522 = vst.msk [vmem:[#allocation2 + $0x1d0] sm:$0xff] %vm382_vm0, %v1375_v1 }
  0x1b   : > { %466 = vst.msk [vmem:[#allocation2 + $0x10] sm:$0xf] %vm465_vm1, %v1375_v1  ;;  %469 = vst.msk [vmem:[#allocation2 + $0x28] sm:$0xf] %vm465_vm1, %v1375_v1 }
  0x1c   : > { %496 = vst.msk [vmem:[#allocation2 + $0x100] sm:$0xf] %vm465_vm1, %v1375_v1  ;;  %520 = vst.msk [vmem:[#allocation2 + $0x1c0] sm:$0xf] %vm465_vm1, %v1375_v1 }
  0x1d   : > { %523 = vst.msk [vmem:[#allocation2 + $0x1d8] sm:$0xf] %vm465_vm1, %v1375_v1  ;;  %472 = vst.msk [vmem:[#allocation2 + $0x40] sm:$0xf] %vm465_vm1, %v1375_v1 }
  0x1e   : > { %475 = vst.msk [vmem:[#allocation2 + $0x58] sm:$0xf] %vm465_vm1, %v1375_v1  ;;  %478 = vst.msk [vmem:[#allocation2 + $0x70] sm:$0xf] %vm465_vm1, %v1375_v1 }
  0x1f   : > { %481 = vst.msk [vmem:[#allocation2 + $0x88] sm:$0xf] %vm465_vm1, %v1375_v1  ;;  %484 = vst.msk [vmem:[#allocation2 + $0xa0] sm:$0xf] %vm465_vm1, %v1375_v1 }
  0x20   : > { %487 = vst.msk [vmem:[#allocation2 + $0xb8] sm:$0xf] %vm465_vm1, %v1375_v1  ;;  %490 = vst.msk [vmem:[#allocation2 + $0xd0] sm:$0xf] %vm465_vm1, %v1375_v1 }
  0x21   : > { %493 = vst.msk [vmem:[#allocation2 + $0xe8] sm:$0xf] %vm465_vm1, %v1375_v1  ;;  %499 = vst.msk [vmem:[#allocation2 + $0x118] sm:$0xf] %vm465_vm1, %v1375_v1 }
  0x22   : > { %502 = vst.msk [vmem:[#allocation2 + $0x130] sm:$0xf] %vm465_vm1, %v1375_v1  ;;  %505 = vst.msk [vmem:[#allocation2 + $0x148] sm:$0xf] %vm465_vm1, %v1375_v1 }
  0x23   : > { %508 = vst.msk [vmem:[#allocation2 + $0x160] sm:$0xf] %vm465_vm1, %v1375_v1  ;;  %511 = vst.msk [vmem:[#allocation2 + $0x178] sm:$0xf] %vm465_vm1, %v1375_v1 }
  0x24   : > { %514 = vst.msk [vmem:[#allocation2 + $0x190] sm:$0xf] %vm465_vm1, %v1375_v1  ;;  %517 = vst.msk [vmem:[#allocation2 + $0x1a8] sm:$0xf] %vm465_vm1, %v1375_v1 }
  0x87   : > { %v380_v6 = vpop.permute.xlu0 %379 }
  0xe7   : > { %v452_v7 = vpop.f32.mrb[0].mxu0 }
  0xe8   : > { %v453_v9 = vadd.f32 %v452_v7, %v380_v6  ;;  %v454_v10 = vpop.f32.mrb[1].mxu0 }
  0xe9   : > { %v455_v12 = vadd.f32 %v454_v10, %v380_v6 }
  0xea   : > { %v459_v13 = vadd.f32 %v457_v8, %v453_v9  ;;  %524 = vxpose.xlu0.b32.start.end [1/1] (short) %v453_v9, 128 }
  0xeb   : > { %v460_v14 = vadd.f32 %v458_v11, %v455_v12  ;;  %556 = vxpose.xlu1.b32.start.end [1/1] (short) %v455_v12, 128 }
  0xec   : > { %461 = vst [vmem:[%s1537_s15] sm:$0xff] %v459_v13 }
  0xed   : > { %462 = vst [vmem:[%s1537_s15 + $0x8] sm:$0xff] %v460_v14 }
 0x16a   : > { %v540_v15 = vpop.trf.xlu0 }
 0x16b   : > { %v572_v16 = vpop.trf.xlu1  ;;  %589 = vst.msk [vmem:[#allocation2 + $0x32] sm:$0xff] %vm382_vm0, %v540_v15 }
 0x16c   : > { %605 = vst.msk [vmem:[#allocation2 + $0xf2] sm:$0xff] %vm382_vm0, %v572_v16 }
 0x16e   : > { %v541_v17 = vpop.trf.xlu0 }
 0x16f   : > { %v573_v18 = vpop.trf.xlu1  ;;  %590 = vst.msk [vmem:[#allocation2 + $0x3a] sm:$0xff] %vm382_vm0, %v541_v17 }
 0x170   : > { %606 = vst.msk [vmem:[#allocation2 + $0xfa] sm:$0xff] %vm382_vm0, %v573_v18 }
 0x172   : > { %v542_v19 = vpop.trf.xlu0 }
 0x173   : > { %v574_v20 = vpop.trf.xlu1  ;;  %591 = vst.msk [vmem:[#allocation2 + $0x4a] sm:$0xff] %vm382_vm0, %v542_v19 }
 0x174   : > { %607 = vst.msk [vmem:[#allocation2 + $0x10a] sm:$0xff] %vm382_vm0, %v574_v20 }
 0x176   : > { %v543_v21 = vpop.trf.xlu0 }
 0x177   : > { %v575_v22 = vpop.trf.xlu1  ;;  %592 = vst.msk [vmem:[#allocation2 + $0x52] sm:$0xff] %vm382_vm0, %v543_v21 }
 0x178   : > { %608 = vst.msk [vmem:[#allocation2 + $0x112] sm:$0xff] %vm382_vm0, %v575_v22 }
 0x17a   : > { %v544_v23 = vpop.trf.xlu0 }
 0x17b   : > { %v576_v24 = vpop.trf.xlu1  ;;  %593 = vst.msk [vmem:[#allocation2 + $0x62] sm:$0xff] %vm382_vm0, %v544_v23 }
 0x17c   : > { %609 = vst.msk [vmem:[#allocation2 + $0x122] sm:$0xff] %vm382_vm0, %v576_v24 }
 0x17e   : > { %v545_v25 = vpop.trf.xlu0 }
 0x17f   : > { %v577_v26 = vpop.trf.xlu1  ;;  %594 = vst.msk [vmem:[#allocation2 + $0x6a] sm:$0xff] %vm382_vm0, %v545_v25 }
 0x180   : > { %610 = vst.msk [vmem:[#allocation2 + $0x12a] sm:$0xff] %vm382_vm0, %v577_v26 }
 0x182   : > { %v546_v27 = vpop.trf.xlu0 }
 0x183   : > { %v578_v28 = vpop.trf.xlu1  ;;  %595 = vst.msk [vmem:[#allocation2 + $0x7a] sm:$0xff] %vm382_vm0, %v546_v27 }
 0x184   : > { %611 = vst.msk [vmem:[#allocation2 + $0x13a] sm:$0xff] %vm382_vm0, %v578_v28 }
 0x186   : > { %v547_v29 = vpop.trf.xlu0 }
 0x187   : > { %v579_v30 = vpop.trf.xlu1  ;;  %596 = vst.msk [vmem:[#allocation2 + $0x82] sm:$0xff] %vm382_vm0, %v547_v29 }
 0x188   : > { %612 = vst.msk [vmem:[#allocation2 + $0x142] sm:$0xff] %vm382_vm0, %v579_v30 }
 0x18a   : > { %v548_v31 = vpop.trf.xlu0 }
 0x18b   : > { %v580_v32 = vpop.trf.xlu1  ;;  %597 = vst.msk [vmem:[#allocation2 + $0x92] sm:$0xff] %vm382_vm0, %v548_v31 }
 0x18c   : > { %613 = vst.msk [vmem:[#allocation2 + $0x152] sm:$0xff] %vm382_vm0, %v580_v32 }
 0x18e   : > { %v549_v33 = vpop.trf.xlu0 }
 0x18f   : > { %v581_v34 = vpop.trf.xlu1  ;;  %598 = vst.msk [vmem:[#allocation2 + $0x9a] sm:$0xff] %vm382_vm0, %v549_v33 }
 0x190   : > { %614 = vst.msk [vmem:[#allocation2 + $0x15a] sm:$0xff] %vm382_vm0, %v581_v34 }
 0x192   : > { %v550_v35 = vpop.trf.xlu0 }
 0x193   : > { %v582_v36 = vpop.trf.xlu1  ;;  %599 = vst.msk [vmem:[#allocation2 + $0xaa] sm:$0xff] %vm382_vm0, %v550_v35 }
 0x194   : > { %615 = vst.msk [vmem:[#allocation2 + $0x16a] sm:$0xff] %vm382_vm0, %v582_v36 }
 0x196   : > { %v551_v37 = vpop.trf.xlu0 }
 0x197   : > { %v583_v38 = vpop.trf.xlu1  ;;  %600 = vst.msk [vmem:[#allocation2 + $0xb2] sm:$0xff] %vm382_vm0, %v551_v37 }
 0x198   : > { %616 = vst.msk [vmem:[#allocation2 + $0x172] sm:$0xff] %vm382_vm0, %v583_v38 }
 0x19a   : > { %v552_v39 = vpop.trf.xlu0 }
 0x19b   : > { %v584_v40 = vpop.trf.xlu1  ;;  %601 = vst.msk [vmem:[#allocation2 + $0xc2] sm:$0xff] %vm382_vm0, %v552_v39 }
 0x19c   : > { %617 = vst.msk [vmem:[#allocation2 + $0x182] sm:$0xff] %vm382_vm0, %v584_v40 }
 0x19e   : > { %v553_v41 = vpop.trf.xlu0 }
 0x19f   : > { %v585_v42 = vpop.trf.xlu1  ;;  %602 = vst.msk [vmem:[#allocation2 + $0xca] sm:$0xff] %vm382_vm0, %v553_v41 }
 0x1a0   : > { %618 = vst.msk [vmem:[#allocation2 + $0x18a] sm:$0xff] %vm382_vm0, %v585_v42 }
 0x1a2   : > { %v554_v43 = vpop.trf.xlu0 }
 0x1a3   : > { %v586_v44 = vpop.trf.xlu1  ;;  %603 = vst.msk [vmem:[#allocation2 + $0xda] sm:$0xff] %vm382_vm0, %v554_v43 }
 0x1a4   : > { %619 = vst.msk [vmem:[#allocation2 + $0x19a] sm:$0xff] %vm382_vm0, %v586_v44 }
 0x1a6   : > { %v555_v45 = vpop.trf.xlu0 }
 0x1a7   : > { %v587_v46 = vpop.trf.xlu1  ;;  %604 = vst.msk [vmem:[#allocation2 + $0xe2] sm:$0xff] %vm382_vm0, %v555_v45 }
 0x1a8   : > { %620 = vst.msk [vmem:[#allocation2 + $0x1a2] sm:$0xff] %vm382_vm0, %v587_v46 }
 0x1a9 LB: >> { %s628_s17 = smul.u32 24, %s1373_s16  ;;  %v1232_v47 = vld [vmem:[%s1771_s3] ss:$0 sm:$0xff]  ;;  %v1233_v48 = vld [vmem:[%s1771_s3 + $0x1] ss:$0 sm:$0xff]  ;;  %s1373_s16 = sphi %s1613_s16, %s626_s16  }
 0x1aa   : >> { %v1234_v49 = vld [vmem:[%s1771_s3 + $0x2] ss:$0 sm:$0xff]  ;;  %v1235_v50 = vld [vmem:[%s1771_s3 + $0x3] ss:$0 sm:$0xff]  ;;  %v1236_v54 = vld [vmem:[%s1771_s3 + $0x4] ss:$0 sm:$0xff] }
 0x1ab   : >> { %s1631_s29 = scalar_lea.vmem [#allocation2], %s628_s17  ;;  %v1239_v8 = vld [vmem:[%s1771_s3 + $0x5] ss:$0 sm:$0xff]  ;;  %v1242_v15 = vld [vmem:[%s1771_s3 + $0x6] ss:$0 sm:$0xff]  ;;  %s1298_s17 = sshll.u32 %s1373_s16, 4 }
 0x1ac   : >> { %v1245_v22 = vld [vmem:[%s1771_s3 + $0x7] ss:$0 sm:$0xff]  ;;  %v1248_v29 = vld [vmem:[%s1771_s3 + $0x8] ss:$0 sm:$0xff]  ;;  %v1251_v36 = vld [vmem:[%s1771_s3 + $0x9] ss:$0 sm:$0xff] }
 0x1ad   : >> { %v1254_v43 = vld [vmem:[%s1771_s3 + $0xa] ss:$0 sm:$0xff]  ;;  %s926_s20 = scalar_lea.vmem [#allocation3], %s1298_s17  ;;  %s626_s16 = sadd.s32 1, %s1373_s16  }
 0x1ae   : >> { %p623_p5 = scmp.ge.s32.totalorder %s626_s16, 16  }
 0x1af   : >> { %v630_v51 = vld [vmem:[%s1631_s29] sm:$0xff]  ;;  %v631_v52 = vld [vmem:[%s1631_s29 + $0x8] sm:$0xff]  ;;  %v1237_v9 = vld [vmem:[%s1631_s29 + $0x18] sm:$0xff] }
 0x1b0   : >> { %v641_v53 = vld [vmem:[%s1631_s29 + $0x1] sm:$0xff]  ;;  %v636_v55 = vmul.f32 %v1232_v47, %v630_v51  ;;  %v637_v56 = vmul.f32 %v1232_v47, %v631_v52  ;;  %v642_v57 = vld [vmem:[%s1631_s29 + $0x9] sm:$0xff]  ;;  %v1240_v16 = vld [vmem:[%s1631_s29 + $0x19] sm:$0xff]  ;;  %v694_v18 = vmul.f32 %v1239_v8, %v1237_v9 }
 0x1b1   : >> { %v647_v58 = vmul.f32 %v1233_v48, %v641_v53  ;;  %v652_v59 = vld [vmem:[%s1631_s29 + $0x2] sm:$0xff]  ;;  %v653_v60 = vld [vmem:[%s1631_s29 + $0xa] sm:$0xff]  ;;  %v648_v61 = vmul.f32 %v1233_v48, %v642_v57  ;;  %v1243_v23 = vld [vmem:[%s1631_s29 + $0x1a] sm:$0xff]  ;;  %v705_v25 = vmul.f32 %v1242_v15, %v1240_v16 }
 0x1b2   : >> { %v658_v62 = vmul.f32 %v1234_v49, %v652_v59  ;;  %v659_v63 = vmul.f32 %v1234_v49, %v653_v60  ;;  %v663_v0 = vld [vmem:[%s1631_s29 + $0x3] sm:$0xff]  ;;  %v664_v1 = vld [vmem:[%s1631_s29 + $0xb] sm:$0xff]  ;;  %v1246_v30 = vld [vmem:[%s1631_s29 + $0x1b] sm:$0xff]  ;;  %v716_v32 = vmul.f32 %v1245_v22, %v1243_v23 }
 0x1b3   : >> { %v674_v2 = vld [vmem:[%s1631_s29 + $0x4] sm:$0xff]  ;;  %v649_v3 = vadd.f32 %v647_v58, %v636_v55  ;;  %v669_v4 = vmul.f32 %v1235_v50, %v663_v0  ;;  %v675_v5 = vld [vmem:[%s1631_s29 + $0xc] sm:$0xff]  ;;  %v650_v6 = vadd.f32 %v648_v61, %v637_v56  ;;  %v670_v7 = vmul.f32 %v1235_v50, %v664_v1  ;;  %v1249_v37 = vld [vmem:[%s1631_s29 + $0x1c] sm:$0xff] }
 0x1b4   : >> { %v680_v11 = vmul.f32 %v1236_v54, %v674_v2  ;;  %v1238_v12 = vld [vmem:[%s1631_s29 + $0x20] sm:$0xff]  ;;  %v681_v14 = vmul.f32 %v1236_v54, %v675_v5  ;;  %v727_v39 = vmul.f32 %v1248_v29, %v1246_v30  ;;  %v1252_v44 = vld [vmem:[%s1631_s29 + $0x30] sm:$0xff]  ;;  %v738_v46 = vmul.f32 %v1251_v36, %v1249_v37  ;;  %v1253_v47 = vld [vmem:[%s1631_s29 + $0x38] sm:$0xff] }
 0x1b5   : >> { %v660_v10 = vadd.f32 %v658_v62, %v649_v3  ;;  %v661_v13 = vadd.f32 %v659_v63, %v650_v6  ;;  %v1241_v19 = vld [vmem:[%s1631_s29 + $0x21] sm:$0xff]  ;;  %v695_v21 = vmul.f32 %v1239_v8, %v1238_v12  ;;  %v1257_v50 = vld [vmem:[%s1771_s3 + $0xb] ss:$0 sm:$0xff]  ;;  %v1255_v51 = vld [vmem:[%s1631_s29 + $0x31] sm:$0xff]  ;;  %v752_v53 = vmul.f32 %v1254_v43, %v1252_v44 }
 0x1b6   : >> { %v1244_v26 = vld [vmem:[%s1631_s29 + $0x22] sm:$0xff]  ;;  %v706_v28 = vmul.f32 %v1242_v15, %v1241_v19  ;;  %v1256_v54 = vld [vmem:[%s1631_s29 + $0x39] sm:$0xff]  ;;  %v753_v56 = vmul.f32 %v1254_v43, %v1253_v47  ;;  %v1260_v57 = vld [vmem:[%s1771_s3 + $0xc] ss:$0 sm:$0xff]  ;;  %v763_v60 = vmul.f32 %v1257_v50, %v1255_v51 }
 0x1b7   : >> { %v671_v17 = vadd.f32 %v669_v4, %v660_v10  ;;  %v672_v20 = vadd.f32 %v670_v7, %v661_v13  ;;  %v1247_v33 = vld [vmem:[%s1631_s29 + $0x23] sm:$0xff]  ;;  %v717_v35 = vmul.f32 %v1245_v22, %v1244_v26  ;;  %v1258_v58 = vld [vmem:[%s1631_s29 + $0x32] sm:$0xff]  ;;  %v1259_v61 = vld [vmem:[%s1631_s29 + $0x3a] sm:$0xff]  ;;  %v764_v63 = vmul.f32 %v1257_v50, %v1256_v54 }
 0x1b8   : >> { %v1250_v40 = vld [vmem:[%s1631_s29 + $0x24] sm:$0xff]  ;;  %v728_v42 = vmul.f32 %v1248_v29, %v1247_v33  ;;  %v1263_v0 = vld [vmem:[%s1771_s3 + $0xd] ss:$0 sm:$0xff]  ;;  %v1261_v1 = vld [vmem:[%s1631_s29 + $0x33] sm:$0xff]  ;;  %v774_v3 = vmul.f32 %v1260_v57, %v1258_v58  ;;  %v775_v6 = vmul.f32 %v1260_v57, %v1259_v61 }
 0x1b9   : >> { %v682_v24 = vadd.f32 %v680_v11, %v671_v17  ;;  %v683_v27 = vadd.f32 %v681_v14, %v672_v20  ;;  %v739_v49 = vmul.f32 %v1251_v36, %v1250_v40  ;;  %v1262_v4 = vld [vmem:[%s1631_s29 + $0x3b] sm:$0xff]  ;;  %v1266_v7 = vld [vmem:[%s1771_s3 + $0xe] ss:$0 sm:$0xff]  ;;  %v785_v10 = vmul.f32 %v1263_v0, %v1261_v1  ;;  %v1269_v14 = vld [vmem:[%s1771_s3 + $0xf] ss:$0 sm:$0xff] }
 0x1ba   : >> { %v1264_v8 = vld [vmem:[%s1631_s29 + $0x34] sm:$0xff]  ;;  %v1265_v11 = vld [vmem:[%s1631_s29 + $0x3c] sm:$0xff]  ;;  %v786_v13 = vmul.f32 %v1263_v0, %v1262_v4  ;;  %v1267_v15 = vld [vmem:[%s1631_s29 + $0x48] sm:$0xff] }
 0x1bb   : >> { %v696_v31 = vadd.f32 %v694_v18, %v682_v24  ;;  %v697_v34 = vadd.f32 %v695_v21, %v683_v27  ;;  %v796_v17 = vmul.f32 %v1266_v7, %v1264_v8  ;;  %v1268_v18 = vld [vmem:[%s1631_s29 + $0x50] sm:$0xff]  ;;  %v797_v20 = vmul.f32 %v1266_v7, %v1265_v11  ;;  %v1282_v50 = vld [vmem:[%s1631_s29 + $0x60] sm:$0xff] }
 0x1bc   : >> { %v1272_v21 = vld [vmem:[%s1771_s3 + $0x10] ss:$0 sm:$0xff]  ;;  %v810_v24 = vmul.f32 %v1269_v14, %v1267_v15  ;;  %v811_v27 = vmul.f32 %v1269_v14, %v1268_v18  ;;  %v1285_v57 = vld [vmem:[%s1631_s29 + $0x61] sm:$0xff] }
 0x1bd   : >> { %v707_v38 = vadd.f32 %v705_v25, %v696_v31  ;;  %v708_v41 = vadd.f32 %v706_v28, %v697_v34  ;;  %v1270_v22 = vld [vmem:[%s1631_s29 + $0x49] sm:$0xff]  ;;  %v1271_v25 = vld [vmem:[%s1631_s29 + $0x51] sm:$0xff] }
 0x1be   : >> { %v1275_v28 = vld [vmem:[%s1771_s3 + $0x11] ss:$0 sm:$0xff]  ;;  %v821_v31 = vmul.f32 %v1272_v21, %v1270_v22  ;;  %v822_v34 = vmul.f32 %v1272_v21, %v1271_v25  ;;  %v1288_v0 = vld [vmem:[%s1631_s29 + $0x62] sm:$0xff] }
 0x1bf   : >> { %v718_v45 = vadd.f32 %v716_v32, %v707_v38  ;;  %v719_v48 = vadd.f32 %v717_v35, %v708_v41  ;;  %v1273_v29 = vld [vmem:[%s1631_s29 + $0x4a] sm:$0xff]  ;;  %v1274_v32 = vld [vmem:[%s1631_s29 + $0x52] sm:$0xff] }
 0x1c0   : >> { %v1278_v35 = vld [vmem:[%s1771_s3 + $0x12] ss:$0 sm:$0xff]  ;;  %v832_v38 = vmul.f32 %v1275_v28, %v1273_v29  ;;  %v833_v41 = vmul.f32 %v1275_v28, %v1274_v32  ;;  %v1291_v7 = vld [vmem:[%s1631_s29 + $0x63] sm:$0xff] }
 0x1c1   : >> { %v729_v52 = vadd.f32 %v727_v39, %v718_v45  ;;  %v730_v55 = vadd.f32 %v728_v42, %v719_v48  ;;  %v1276_v36 = vld [vmem:[%s1631_s29 + $0x4b] sm:$0xff]  ;;  %v1277_v39 = vld [vmem:[%s1631_s29 + $0x53] sm:$0xff] }
 0x1c2   : >> { %v1281_v42 = vld [vmem:[%s1771_s3 + $0x13] ss:$0 sm:$0xff]  ;;  %v843_v45 = vmul.f32 %v1278_v35, %v1276_v36  ;;  %v844_v48 = vmul.f32 %v1278_v35, %v1277_v39  ;;  %v1294_v14 = vld [vmem:[%s1631_s29 + $0x64] sm:$0xff] }
 0x1c3   : >> { %v740_v59 = vadd.f32 %v738_v46, %v729_v52  ;;  %v741_v62 = vadd.f32 %v739_v49, %v730_v55  ;;  %v1279_v43 = vld [vmem:[%s1631_s29 + $0x4c] sm:$0xff]  ;;  %v1280_v46 = vld [vmem:[%s1631_s29 + $0x54] sm:$0xff] }
 0x1c4   : >> { %v1284_v49 = vld [vmem:[%s1771_s3 + $0x14] ss:$0 sm:$0xff]  ;;  %v854_v52 = vmul.f32 %v1281_v42, %v1279_v43  ;;  %v855_v55 = vmul.f32 %v1281_v42, %v1280_v46 }
 0x1c5   : >> { %v754_v2 = vadd.f32 %v752_v53, %v740_v59  ;;  %v755_v5 = vadd.f32 %v753_v56, %v741_v62  ;;  %v1283_v53 = vld [vmem:[%s1631_s29 + $0x68] sm:$0xff]  ;;  %v1287_v56 = vld [vmem:[%s1771_s3 + $0x15] ss:$0 sm:$0xff]  ;;  %v868_v59 = vmul.f32 %v1284_v49, %v1282_v50 }
 0x1c6   : >> { %v869_v62 = vmul.f32 %v1284_v49, %v1283_v53 }
 0x1c7   : >> { %v765_v9 = vadd.f32 %v763_v60, %v754_v2  ;;  %v766_v12 = vadd.f32 %v764_v63, %v755_v5  ;;  %v1286_v60 = vld [vmem:[%s1631_s29 + $0x69] sm:$0xff]  ;;  %v1290_v63 = vld [vmem:[%s1771_s3 + $0x16] ss:$0 sm:$0xff]  ;;  %v879_v2 = vmul.f32 %v1287_v56, %v1285_v57 }
 0x1c8   : >> { %v880_v5 = vmul.f32 %v1287_v56, %v1286_v60 }
 0x1c9   : >> { %v776_v16 = vadd.f32 %v774_v3, %v765_v9  ;;  %v777_v19 = vadd.f32 %v775_v6, %v766_v12  ;;  %v1289_v3 = vld [vmem:[%s1631_s29 + $0x6a] sm:$0xff]  ;;  %v1293_v6 = vld [vmem:[%s1771_s3 + $0x17] ss:$0 sm:$0xff]  ;;  %v890_v9 = vmul.f32 %v1290_v63, %v1288_v0 }
 0x1ca   : >> { %v891_v12 = vmul.f32 %v1290_v63, %v1289_v3  ;;  %v1300_v63 = vld [vmem:[%s1530_s12 + $0x18] sm:$0xff] (%p623_p5)  ;;  %v1299_v0 = vld [vmem:[%s1530_s12 + $0x10] sm:$0xff] (%p623_p5) }
 0x1cb   : >> { %v787_v23 = vadd.f32 %v785_v10, %v776_v16  ;;  %v788_v26 = vadd.f32 %v786_v13, %v777_v19  ;;  %v1292_v10 = vld [vmem:[%s1631_s29 + $0x6b] sm:$0xff]  ;;  %v1296_v13 = vld [vmem:[%s1771_s3 + $0x18] ss:$0 sm:$0xff]  ;;  %v901_v16 = vmul.f32 %v1293_v6, %v1291_v7 }
 0x1cc   : >> { %v902_v19 = vmul.f32 %v1293_v6, %v1292_v10  ;;  %v912_v21 = vmul.f32 %v1296_v13, %v1294_v14 }
 0x1cd   : >> { %v798_v30 = vadd.f32 %v796_v17, %v787_v23  ;;  %v799_v33 = vadd.f32 %v797_v20, %v788_v26  ;;  %v1295_v17 = vld [vmem:[%s1631_s29 + $0x6c] sm:$0xff]  ;;  %v1297_v26 = vld [vmem:[%s1772_s4] ss:$0 sm:$0xff] }
 0x1ce   : >> { %v913_v23 = vmul.f32 %v1296_v13, %v1295_v17 }
 0x1cf   : >> { %v812_v37 = vadd.f32 %v810_v24, %v798_v30  ;;  %v813_v40 = vadd.f32 %v811_v27, %v799_v33 }
 0x1d1   : >> { %v823_v44 = vadd.f32 %v821_v31, %v812_v37  ;;  %v824_v47 = vadd.f32 %v822_v34, %v813_v40 }
 0x1d3   : >> { %v834_v51 = vadd.f32 %v832_v38, %v823_v44  ;;  %v835_v54 = vadd.f32 %v833_v41, %v824_v47 }
 0x1d5   : >> { %v845_v58 = vadd.f32 %v843_v45, %v834_v51  ;;  %v846_v61 = vadd.f32 %v844_v48, %v835_v54 }
 0x1d7   : >> { %v856_v1 = vadd.f32 %v854_v52, %v845_v58  ;;  %v857_v4 = vadd.f32 %v855_v55, %v846_v61 }
 0x1d9   : >> { %v870_v8 = vadd.f32 %v868_v59, %v856_v1  ;;  %v871_v11 = vadd.f32 %v869_v62, %v857_v4 }
 0x1db   : >> { %v881_v15 = vadd.f32 %v879_v2, %v870_v8  ;;  %v882_v18 = vadd.f32 %v880_v5, %v871_v11 }
 0x1dd   : >> { %v892_v20 = vadd.f32 %v890_v9, %v881_v15  ;;  %v893_v22 = vadd.f32 %v891_v12, %v882_v18 }
 0x1df   : >> { %v903_v24 = vadd.f32 %v901_v16, %v892_v20  ;;  %v904_v25 = vadd.f32 %v902_v19, %v893_v22  ;;  %625 = sbr.rel (!%p623_p5) target bundleno = 425 (0x1a9), region = 105 }
 0x1e1   : >> { %v914_v27 = vadd.f32 %v912_v21, %v903_v24  ;;  %v915_v28 = vadd.f32 %v913_v23, %v904_v25 }
 0x1e3   : >> { %v923_v29 = vadd.f32 %v1297_v26, %v914_v27  ;;  %v924_v30 = vadd.f32 %v1297_v26, %v915_v28 }
 0x1e5   : >> { %927 = vst.msk [vmem:[%s926_s20] sm:$0xff] %vm382_vm0, %v923_v29  ;;  %928 = vst.msk [vmem:[%s926_s20 + $0x8] sm:$0xff] %vm382_vm0, %v924_v30 }
 0x1ec   : > { %v945_v31 = vld [vmem:[#allocation3 + $0x80] sm:$0xff]  ;;  %v946_v33 = vld [vmem:[#allocation3 + $0x88] sm:$0xff]  ;;  %v947_v35 = vld [vmem:[#allocation3 + $0x90] sm:$0xff] }
 0x1ed   : > { %v929_v32 = vld [vmem:[#allocation3] sm:$0xff]  ;;  %993 = vxpose.xlu1.b32.start [1/16] (narrow) %v945_v31, 8  ;;  %v930_v34 = vld [vmem:[#allocation3 + $0x8] sm:$0xff]  ;;  %v931_v36 = vld [vmem:[#allocation3 + $0x10] sm:$0xff] }
 0x1ee   : > { %961 = vxpose.xlu0.b32.start [1/16] (narrow) %v929_v32, 8  ;;  %v948_v37 = vld [vmem:[#allocation3 + $0x98] sm:$0xff]  ;;  %v949_v39 = vld [vmem:[#allocation3 + $0xa0] sm:$0xff]  ;;  %v950_v41 = vld [vmem:[#allocation3 + $0xa8] sm:$0xff] }
 0x1ef   : > { %v932_v38 = vld [vmem:[#allocation3 + $0x18] sm:$0xff]  ;;  %v933_v40 = vld [vmem:[#allocation3 + $0x20] sm:$0xff]  ;;  %v934_v42 = vld [vmem:[#allocation3 + $0x28] sm:$0xff] }
 0x1f0   : > { %v951_v43 = vld [vmem:[#allocation3 + $0xb0] sm:$0xff]  ;;  %v952_v45 = vld [vmem:[#allocation3 + $0xb8] sm:$0xff]  ;;  %v953_v47 = vld [vmem:[#allocation3 + $0xc0] sm:$0xff] }
 0x1f1   : > { %994 = vxpose.xlu1.b32.cont [2/16] (narrow) %v946_v33, 8  ;;  %v935_v44 = vld [vmem:[#allocation3 + $0x30] sm:$0xff]  ;;  %v936_v46 = vld [vmem:[#allocation3 + $0x38] sm:$0xff]  ;;  %v937_v48 = vld [vmem:[#allocation3 + $0x40] sm:$0xff] }
 0x1f2   : > { %962 = vxpose.xlu0.b32.cont [2/16] (narrow) %v930_v34, 8  ;;  %v954_v49 = vld [vmem:[#allocation3 + $0xc8] sm:$0xff]  ;;  %v955_v51 = vld [vmem:[#allocation3 + $0xd0] sm:$0xff]  ;;  %v956_v53 = vld [vmem:[#allocation3 + $0xd8] sm:$0xff] }
 0x1f3   : > { %v938_v50 = vld [vmem:[#allocation3 + $0x48] sm:$0xff]  ;;  %v939_v52 = vld [vmem:[#allocation3 + $0x50] sm:$0xff]  ;;  %v940_v54 = vld [vmem:[#allocation3 + $0x58] sm:$0xff] }
 0x1f4   : > { %v957_v55 = vld [vmem:[#allocation3 + $0xe0] sm:$0xff]  ;;  %v958_v57 = vld [vmem:[#allocation3 + $0xe8] sm:$0xff]  ;;  %v959_v59 = vld [vmem:[#allocation3 + $0xf0] sm:$0xff] }
 0x1f5   : > { %995 = vxpose.xlu1.b32.cont [3/16] (narrow) %v947_v35, 8  ;;  %v941_v56 = vld [vmem:[#allocation3 + $0x60] sm:$0xff]  ;;  %v942_v58 = vld [vmem:[#allocation3 + $0x68] sm:$0xff]  ;;  %v943_v60 = vld [vmem:[#allocation3 + $0x70] sm:$0xff] }
 0x1f6   : > { %963 = vxpose.xlu0.b32.cont [3/16] (narrow) %v931_v36, 8  ;;  %v960_v61 = vld [vmem:[#allocation3 + $0xf8] sm:$0xff] }
 0x1f7   : > { %v944_v62 = vld [vmem:[#allocation3 + $0x78] sm:$0xff] }
 0x1f9   : > { %996 = vxpose.xlu1.b32.cont [4/16] (narrow) %v948_v37, 8 }
 0x1fa   : > { %964 = vxpose.xlu0.b32.cont [4/16] (narrow) %v932_v38, 8 }
 0x1fd   : > { %997 = vxpose.xlu1.b32.cont [5/16] (narrow) %v949_v39, 8 }
 0x1fe   : > { %965 = vxpose.xlu0.b32.cont [5/16] (narrow) %v933_v40, 8 }
 0x201   : > { %998 = vxpose.xlu1.b32.cont [6/16] (narrow) %v950_v41, 8 }
 0x202   : > { %966 = vxpose.xlu0.b32.cont [6/16] (narrow) %v934_v42, 8 }
 0x205   : > { %999 = vxpose.xlu1.b32.cont [7/16] (narrow) %v951_v43, 8 }
 0x206   : > { %967 = vxpose.xlu0.b32.cont [7/16] (narrow) %v935_v44, 8 }
 0x209   : > { %1000 = vxpose.xlu1.b32.cont [8/16] (narrow) %v952_v45, 8 }
 0x20a   : > { %968 = vxpose.xlu0.b32.cont [8/16] (narrow) %v936_v46, 8 }
 0x20d   : > { %1001 = vxpose.xlu1.b32.cont [9/16] (narrow) %v953_v47, 8 }
 0x20e   : > { %969 = vxpose.xlu0.b32.cont [9/16] (narrow) %v937_v48, 8 }
 0x211   : > { %1002 = vxpose.xlu1.b32.cont [10/16] (narrow) %v954_v49, 8 }
 0x212   : > { %970 = vxpose.xlu0.b32.cont [10/16] (narrow) %v938_v50, 8 }
 0x215   : > { %1003 = vxpose.xlu1.b32.cont [11/16] (narrow) %v955_v51, 8 }
 0x216   : > { %971 = vxpose.xlu0.b32.cont [11/16] (narrow) %v939_v52, 8 }
 0x219   : > { %1004 = vxpose.xlu1.b32.cont [12/16] (narrow) %v956_v53, 8 }
 0x21a   : > { %972 = vxpose.xlu0.b32.cont [12/16] (narrow) %v940_v54, 8 }
 0x21d   : > { %1005 = vxpose.xlu1.b32.cont [13/16] (narrow) %v957_v55, 8 }
 0x21e   : > { %973 = vxpose.xlu0.b32.cont [13/16] (narrow) %v941_v56, 8 }
 0x221   : > { %1006 = vxpose.xlu1.b32.cont [14/16] (narrow) %v958_v57, 8 }
 0x222   : > { %974 = vxpose.xlu0.b32.cont [14/16] (narrow) %v942_v58, 8 }
 0x225   : > { %1007 = vxpose.xlu1.b32.cont [15/16] (narrow) %v959_v59, 8 }
 0x226   : > { %975 = vxpose.xlu0.b32.cont [15/16] (narrow) %v943_v60, 8 }
 0x229   : > { %1008 = vxpose.xlu1.b32.end [16/16] (narrow) %v960_v61, 8 }
 0x22a   : > { %976 = vxpose.xlu0.b32.end [16/16] (narrow) %v944_v62, 8 }
 0x26d   : > { %v1009_v1 = vpop.trf.xlu1 }
 0x26e   : > { %v977_v2 = vpop.trf.xlu0  ;;  %v1029_v3 = vadd.f32 %v1300_v63, %v1009_v1 }
 0x26f   : > { %v1028_v4 = vadd.f32 %v1299_v0, %v977_v2 }
 0x270   : > { %1302 = vst [vmem:[%s1537_s15 + $0x18] sm:$0xff] %v1029_v3 }
 0x271   : > { %1301 = vst [vmem:[%s1537_s15 + $0x10] sm:$0xff] %v1028_v4 }
 0x272 PF: > { %s16_s23 = sadd.s32 1, %s1369_s23   ;;  %s1775_s21 = smov %s1365_s22 }
 0x273   : > { %p13_p6 = scmp.ge.s32.totalorder %s16_s23, 4   ;;  %s1776_s22 = smov %s1778_s24 }
 0x275   :  { %15 = sbr.rel (!%p13_p6) target bundleno = 2 (0x2), region = 116 }

</bundles_post_ra>
